<compile_context>
chip_gen: v5e
topology: v5e:2x2
jax: 0.10.0
libtpu: 0.0.40
codegen_flags: <defaults>
</compile_context>

<pallas_src>
import functools

import jax
import jax.numpy as jnp
import numpy as np
from jax.experimental import pallas as pl
from jax.experimental.pallas import tpu as pltpu


def _round_up(x, m):
    return ((x + m - 1) // m) * m


# ----------------------------------------------------------------------------
# Probe: does this JAX build accept BlockSpec(pipeline_mode=pl.Buffered(1))?
# Used to single-buffer loop-invariant inputs (saves a W_hh-sized VMEM buffer).
# Falls back cleanly to default double-buffering if unsupported.
# ----------------------------------------------------------------------------
_BUFFERED_OK = None


def _buffered_single_supported():
    global _BUFFERED_OK
    if _BUFFERED_OK is not None:
        return _BUFFERED_OK
    if not hasattr(pl, "Buffered"):
        _BUFFERED_OK = False
        return _BUFFERED_OK
    try:
        def _probe_kernel(w_ref, x_ref, o_ref):
            o_ref[...] = x_ref[...] + w_ref[...]

        w_spec = pl.BlockSpec((8, 128), lambda i, j: (i, 0),
                              pipeline_mode=pl.Buffered(1))
        fn = pl.pallas_call(
            _probe_kernel,
            out_shape=jax.ShapeDtypeStruct((16, 256), jnp.float32),
            grid=(2, 2),
            in_specs=[w_spec, pl.BlockSpec((8, 128), lambda i, j: (i, j))],
            out_specs=pl.BlockSpec((8, 128), lambda i, j: (i, j)),
        )
        w = jnp.arange(16 * 128, dtype=jnp.float32).reshape(16, 128)
        x = 0.001 * jnp.arange(16 * 256, dtype=jnp.float32).reshape(16, 256)
        got = jax.block_until_ready(fn(w, x))
        want = x + jnp.concatenate([w, w], axis=1)
        _BUFFERED_OK = bool(np.allclose(np.asarray(got), np.asarray(want),
                                        atol=1e-5, rtol=1e-5))
    except Exception:  # pragma: no cover — depends on the jax/Mosaic build
        _BUFFERED_OK = False
    return _BUFFERED_OK


def _spec(shape, index_map, *, single_buffer=False):
    if single_buffer and _buffered_single_supported():
        return pl.BlockSpec(shape, index_map, pipeline_mode=pl.Buffered(1))
    return pl.BlockSpec(shape, index_map)


# ----------------------------------------------------------------------------
# Recurrent kernel: grid = (L, NB, NT) = (layer, batch shard, time block).
# Layer and batch shards are parallel; time is the sequential recurrence.
# Hidden state lives in VMEM scratch across time blocks and is re-initialized
# from h0 at the first time block of every (layer, batch-shard) pair.
# ----------------------------------------------------------------------------
def _gru_kernel(gi_ref, whh_ref, bhn_ref, h0_ref, len_ref,
                out_ref, hn_ref, h_scratch, *, tt, hp, unroll):
    tb = pl.program_id(2)
    is_last_layer = pl.program_id(0) == pl.num_programs(0) - 1

    @pl.when(tb == 0)
    def _():
        h_scratch[...] = h0_ref[...]

    whh = whh_ref[0]                        # (Hp, 3Hp)  bf16 or f32
    bhn = bhn_ref[0]                        # (1, Hp)    f32 (b_hh of the n gate)
    bt = h_scratch.shape[0]
    # lengths arrive as a (Bt, 128) int32 tile; hoist the lane broadcast once per block
    lens = jnp.broadcast_to(len_ref[:, 0:1], (bt, hp))
    t0 = tb * tt

    def step(i, carry):
        h = h_scratch[...]                                        # (Bt, Hp) f32
        gh = jnp.dot(h.astype(whh.dtype), whh,
                     preferred_element_type=jnp.float32)          # (Bt, 3Hp) f32
        gi = gi_ref[0, i].astype(jnp.float32)                     # (Bt, 3Hp) f32
        r = jax.nn.sigmoid(gi[:, 0:hp] + gh[:, 0:hp])
        z = jax.nn.sigmoid(gi[:, hp:2 * hp] + gh[:, hp:2 * hp])
        n = jnp.tanh(gi[:, 2 * hp:3 * hp] + r * (gh[:, 2 * hp:3 * hp] + bhn))
        # (1-z)*n + z*h  ==  n + z*(h - n)   (one fewer full-width VALU op)
        h_next = n + z * (h - n)
        # length mask: finished sequences keep their previous hidden state
        h_new = jnp.where((t0 + i) < lens, h_next, h)

        @pl.when(is_last_layer)               # only the last layer's timeline is consumed
        def _():
            out_ref[i] = h_new

        h_scratch[...] = h_new
        return carry

    jax.lax.fori_loop(0, tt, step, 0, unroll=unroll)
    # final hidden per (layer, batch shard); block is resident across time blocks,
    # so it is written back to HBM only once per (layer, shard).
    hn_ref[0] = h_scratch[...]


def _gru_recurrent_call(gi_p, whh_in, bhn_p, h0_p, len_blk, *,
                        L, NB, NT, Tt, Bt, Hp, unroll, vmem_limit):
    G = 3 * Hp
    Tp = NT * Tt
    Bp = NB * Bt
    # Trailing sacrificial time blocks absorb the (never-read) writeback of the
    # non-final layers' resident output block — distinct per layer, so race-free
    # under megacore layer sharding.
    Tout = Tp + (L - 1) * Tt

    if L == 1:
        def out_imap(l, b, t):
            return (t, b, 0)
    else:
        def out_imap(l, b, t):
            last = jnp.asarray(l >= L - 1, jnp.int32)
            return (last * t + (1 - last) * (NT + l), b, 0)

    kernel = functools.partial(_gru_kernel, tt=Tt, hp=Hp, unroll=unroll)
    return pl.pallas_call(
        kernel,
        out_shape=(jax.ShapeDtypeStruct((Tout, Bp, Hp), jnp.float32),
                   jax.ShapeDtypeStruct((L, Bp, Hp), jnp.float32)),
        grid_spec=pltpu.PrefetchScalarGridSpec(
            num_scalar_prefetch=0,
            grid=(L, NB, NT),
            in_specs=[
                pl.BlockSpec((1, Tt, Bt, G), lambda l, b, t: (l, t, b, 0)),       # GI
                _spec((1, Hp, G), lambda l, b, t: (l, 0, 0), single_buffer=True),  # W_hh
                _spec((1, 1, Hp), lambda l, b, t: (l, 0, 0), single_buffer=True),  # b_hh_n
                _spec((Bt, Hp),   lambda l, b, t: (b, 0),    single_buffer=True),  # h0
                _spec((Bt, 128),  lambda l, b, t: (b, 0),    single_buffer=True),  # lengths
            ],
            out_specs=[
                pl.BlockSpec((Tt, Bt, Hp), out_imap),                 # last-layer timeline
                pl.BlockSpec((1, Bt, Hp), lambda l, b, t: (l, b, 0)),  # h_n per layer
            ],
            scratch_shapes=[pltpu.VMEM((Bt, Hp), jnp.float32)],
        ),
        compiler_params=pltpu.CompilerParams(
            dimension_semantics=("parallel", "parallel", "arbitrary"),
            vmem_limit_bytes=int(vmem_limit)),
    )(gi_p, whh_in, bhn_p, h0_p, len_blk)


# ----------------------------------------------------------------------------
# Parameter packing: gate-fused, lane-padded layouts.
#   w_ih -> (L, D, 3Hp)   columns [g*Hp : g*Hp+H] hold gate g (r, z, n)
#   w_hh -> (L, Hp, 3Hp)
#   bias -> b_ih(all) + b_hh(r,z) folded into the projection bias (L, 3Hp);
#           b_hh(n) kept separate as (L, 1, Hp) (needed because of the r * gh_n term).
# ----------------------------------------------------------------------------
def pack_gru_params(params, H, Hp):
    L = len(params)
    D = params[0]["w_ih"].shape[1]
    G = 3 * Hp
    wih_p = jnp.zeros((L, D, G), jnp.float32)
    whh_p = jnp.zeros((L, Hp, G), jnp.float32)
    bih_p = jnp.zeros((L, G), jnp.float32)
    bhn_p = jnp.zeros((L, 1, Hp), jnp.float32)
    for l, p in enumerate(params):
        assert p["w_ih"].shape[1] == D, "layer stacking requires uniform input size"
        for g in range(3):
            wih_p = wih_p.at[l, :, g * Hp:g * Hp + H].set(p["w_ih"][g])
            whh_p = whh_p.at[l, :H, g * Hp:g * Hp + H].set(p["w_hh"][g])
        bih_p = bih_p.at[l, 0 * Hp:0 * Hp + H].set(p["b_ih"][0, 0] + p["b_hh"][0, 0])
        bih_p = bih_p.at[l, 1 * Hp:1 * Hp + H].set(p["b_ih"][1, 0] + p["b_hh"][1, 0])
        bih_p = bih_p.at[l, 2 * Hp:2 * Hp + H].set(p["b_ih"][2, 0])
        bhn_p = bhn_p.at[l, 0, :H].set(p["b_hh"][2, 0])
    return wih_p, whh_p, bih_p, bhn_p


def _vmem_plan(time_block, max_time, Bt, Hp, gi_bytes, whh_bytes, whh_bufs, budget_bytes):
    """Largest Tt <= time_block whose blocks fit the VMEM budget, plus the need."""
    fixed = (whh_bufs * Hp * 3 * Hp * whh_bytes     # W_hh buffer(s)
             + whh_bufs * Hp * 4                    # b_hh_n
             + 2 * Bt * Hp * 4                      # h0
             + 2 * Bt * 128 * 4                     # lengths
             + 2 * Bt * Hp * 4                      # h_n output buffers
             + Bt * Hp * 4)                         # h scratch
    per_t = 2 * Bt * 3 * Hp * gi_bytes + 2 * Bt * Hp * 4   # GI + out, double-buffered
    tt = max(1, min(int(time_block), int(max_time)))
    while tt > 1 and fixed + tt * per_t > budget_bytes:
        tt -= 1
    return tt, fixed + tt * per_t


def gru_forward(x, params, hx=None, length=None, *, max_time=None,
                time_block=16, use_bf16=True, batch_blocks=1, vmem_budget_mb=44):
    """Mirrors GRU.forward (batch_first=False).  x: [T, B, D] float32.

    max_time: static number of recurrent steps.  Default runs all T steps (the
    length mask freezes finished sequences), which keeps this function jittable
    with a traced `length`.  Pass max_time=int(length.max()) from the caller to
    reproduce the reference's _truncate_max_len output length exactly.
    batch_blocks: set to 2 on v7x when num_layers == 1 to engage the 2nd TensorCore.
    """
    T, B, D = x.shape
    L = len(params)
    H = params[0]["w_hh"].shape[-1]

    if length is None:
        length = jnp.full((B,), T, dtype=jnp.int32)
    length = jnp.asarray(length).astype(jnp.int32)

    if max_time is None:
        max_time = T
    max_time = max(1, min(int(max_time), T))

    if hx is None:
        hx = jnp.zeros((B, H), dtype=jnp.float32)

    lane = 128 if H <= 128 else 256            # 256-align contraction for v6e/v7x MXU
    Hp = _round_up(H, lane)
    NB = max(1, int(batch_blocks))
    Bt = _round_up(max(1, -(-B // NB)), 8)     # sublane-aligned batch shard
    Bp = Bt * NB

    gi_dtype = jnp.bfloat16 if use_bf16 else jnp.float32
    whh_dtype = jnp.bfloat16 if use_bf16 else jnp.float32
    whh_bufs = 1 if _buffered_single_supported() else 2

    Tt, vmem_need = _vmem_plan(time_block, max_time, Bt, Hp,
                               jnp.dtype(gi_dtype).itemsize,
                               jnp.dtype(whh_dtype).itemsize,
                               whh_bufs, vmem_budget_mb << 20)
    NT = -(-max_time // Tt)
    Tp = NT * Tt
    vmem_limit = max(32 << 20, min(int(vmem_need * 1.25) + (2 << 20), 110 << 20))
    # Fully unroll the time loop for small hidden tiles; partial unroll for large ones.
    unroll = Tt if Bt * Hp <= 64 * 1024 else min(4, Tt)

    wih_p, whh_p, bih_p, bhn_p = pack_gru_params(params, H, Hp)

    # Hoisted input projection, produced directly in the padded/blocked layout:
    # pad x BEFORE the einsum so there is no extra HBM pass over the big GI tensor.
    xs = jnp.pad(x[:max_time], ((0, Tp - max_time), (0, Bp - B), (0, 0)))
    if use_bf16:
        gi = jnp.einsum("tbd,ldg->ltbg",
                        xs.astype(jnp.bfloat16), wih_p.astype(jnp.bfloat16),
                        preferred_element_type=jnp.float32)
    else:
        gi = jnp.einsum("tbd,ldg->ltbg", xs, wih_p,
                        precision=jax.lax.Precision.HIGHEST,
                        preferred_element_type=jnp.float32)
    # bias add + (optional) bf16 downcast fuse into the einsum epilogue
    gi = (gi + bih_p[:, None, None, :]).astype(gi_dtype)        # (L, Tp, Bp, 3Hp)

    h0_p = jnp.pad(hx.astype(jnp.float32), ((0, Bp - B), (0, Hp - H)))
    length_eff = jnp.minimum(length, max_time)   # stay frozen during padded time steps
    len_p = jnp.pad(length_eff, (0, Bp - B))     # padded rows: length 0 -> never updated
    len_blk = jnp.broadcast_to(len_p[:, None], (Bp, 128)).astype(jnp.int32)

    whh_in = whh_p.astype(whh_dtype)

    out_p, hn_p = _gru_recurrent_call(
        gi, whh_in, bhn_p, h0_p, len_blk,
        L=L, NB=NB, NT=NT, Tt=Tt, Bt=Bt, Hp=Hp, unroll=unroll,
        vmem_limit=vmem_limit)

    output = out_p[:max_time, :B, :H]   # last layer, per-timestep masked hidden states
    h_n = hn_p[:, :B, :H]               # final hidden state per layer
    return output, h_n


# ----------------------------------------------------------------------------
# Init + pure-JAX reference (same semantics) for the correctness check.
# ----------------------------------------------------------------------------
def init_gru_params(key, input_size, hidden_size, num_layers):
    """Deterministic init mimicking nn.GRUCell.reset_parameters U(-1/sqrt(H), 1/sqrt(H))."""
    stdv = 1.0 / (hidden_size ** 0.5)
    params = []
    for layer in range(num_layers):
        d_in = input_size if layer == 0 else hidden_size
        key, k1, k2, k3, k4 = jax.random.split(key, 5)
        params.append(dict(
            w_ih=jax.random.uniform(k1, (3, d_in, hidden_size), jnp.float32, -stdv, stdv),
            w_hh=jax.random.uniform(k2, (3, hidden_size, hidden_size), jnp.float32, -stdv, stdv),
            b_ih=jax.random.uniform(k3, (3, 1, hidden_size), jnp.float32, -stdv, stdv),
            b_hh=jax.random.uniform(k4, (3, 1, hidden_size), jnp.float32, -stdv, stdv),
        ))
    return params


def _gru_forward_ref(x, params, hx, length):
    T, B, D = x.shape
    max_time = int(jax.device_get(jnp.max(length)))
    dot = functools.partial(jnp.dot, precision=jax.lax.Precision.HIGHEST)

    def one_layer(p):
        h = hx
        outs = []
        for t in range(max_time):
            x_t = x[t]
            gi = [dot(x_t, p["w_ih"][g]) + p["b_ih"][g] for g in range(3)]
            gh = [dot(h, p["w_hh"][g]) + p["b_hh"][g] for g in range(3)]
            r = jax.nn.sigmoid(gi[0] + gh[0])
            z = jax.nn.sigmoid(gi[1] + gh[1])
            n = jnp.tanh(gi[2] + r * gh[2])
            h_next = (1.0 - z) * n + z * h
            mask = (t < length).astype(jnp.float32)[:, None]
            h = mask * h_next + (1.0 - mask) * h
            outs.append(h)
        return jnp.stack(outs, 0), h

    h_n = []
    out = None
    for p in params:
        out, hl = one_layer(p)
        h_n.append(hl)
    return out, jnp.stack(h_n, 0)


# TODO(synk): the module's dropout_layer is constructed but never applied in the
# reference forward(), so it is intentionally not modelled here.

if __name__ == "__main__":
    T, B, D, H, L = 8, 2, 32, 32, 2   # input_size == hidden_size (see NOTE above)
    key = jax.random.PRNGKey(0)
    kx, kp = jax.random.split(key)

    x = jax.random.normal(kx, (T, B, D), dtype=jnp.float32)
    length = jnp.array([8, 5], dtype=jnp.int32)
    params = init_gru_params(kp, D, H, L)

    out_ref, h_n_ref = _gru_forward_ref(x, params, jnp.zeros((B, H), jnp.float32), length)

    # f32 matmul path (tight tolerance)
    out32, hn32 = gru_forward(x, params, length=length, use_bf16=False)
    out32, hn32 = jax.block_until_ready((out32, hn32))
    assert out32.shape == (T, B, H) and hn32.shape == (L, B, H)
    assert jnp.allclose(out32, out_ref, atol=5e-4, rtol=5e-4)
    assert jnp.allclose(hn32, h_n_ref, atol=5e-4, rtol=5e-4)

    # bf16 MXU fast path (bf16 GI storage + bf16 hidden matmul, f32 gate math)
    outbf, hnbf = gru_forward(x, params, length=length, use_bf16=True)
    outbf, hnbf = jax.block_until_ready((outbf, hnbf))
    assert jnp.allclose(outbf, out_ref, atol=5e-2, rtol=5e-2)
    assert jnp.allclose(hnbf, h_n_ref, atol=5e-2, rtol=5e-2)

    # batch-sharded path (megacore for v7x when L == 1); numerics must be identical
    outmb, hnmb = gru_forward(x, params, length=length, use_bf16=False, batch_blocks=2)
    outmb, hnmb = jax.block_until_ready((outmb, hnmb))
    assert jnp.allclose(outmb, out_ref, atol=5e-4, rtol=5e-4)
    assert jnp.allclose(hnmb, h_n_ref, atol=5e-4, rtol=5e-4)

    print("KERNEL_OK")
</pallas_src>

<mosaic_0001>
module attributes {stable_mosaic.version = 11 : i64} {
  func.func @_probe_kernel(%arg0: i32, %arg1: i32, %arg2: memref<8x128xf32, #tpu.memory_space<vmem>>, %arg3: memref<8x128xf32, #tpu.memory_space<vmem>>, %arg4: memref<8x128xf32, #tpu.memory_space<vmem>>) attributes {dimension_semantics = [#tpu.dimension_semantics<arbitrary>, #tpu.dimension_semantics<arbitrary>], iteration_bounds = array<i64: 2, 2>, scalar_prefetch = 0 : i64, scratch_operands = 0 : i64, tpu.core_type = #tpu.core_type<tc>, window_params = [{pipeline_mode = #tpu.pipeline_mode<synchronous>, transform_indices = @transform_0, window_bounds = array<i64: 8, 128>}, {transform_indices = @transform_1, window_bounds = array<i64: 8, 128>}, {transform_indices = @transform_2, window_bounds = array<i64: 8, 128>}]} {
    %c0 = arith.constant 0 : index
    %c0_0 = arith.constant 0 : index
    %0 = vector.load %arg3[%c0, %c0_0] : memref<8x128xf32, #tpu.memory_space<vmem>>, vector<8x128xf32>
    %c0_1 = arith.constant 0 : index
    %c0_2 = arith.constant 0 : index
    %1 = vector.load %arg2[%c0_1, %c0_2] : memref<8x128xf32, #tpu.memory_space<vmem>>, vector<8x128xf32>
    %2 = arith.addf %0, %1 : vector<8x128xf32>
    %c0_3 = arith.constant 0 : index
    %c0_4 = arith.constant 0 : index
    %3 = vector.load %arg4[%c0_3, %c0_4] : memref<8x128xf32, #tpu.memory_space<vmem>>, vector<8x128xf32>
    tpu.vector_store %arg4[%c0_3, %c0_4], %2 {strides = array<i32>} : memref<8x128xf32, #tpu.memory_space<vmem>>, vector<8x128xf32>,
    return
  }
  func.func @transform_0(%arg0: i32, %arg1: i32) -> (i32, i32) {
    %c0_i32 = arith.constant 0 : i32
    %c0_i32_0 = arith.constant 0 : i32
    return %arg0, %c0_i32 : i32, i32
  }
  func.func @transform_1(%arg0: i32, %arg1: i32) -> (i32, i32) {
    %c0_i32 = arith.constant 0 : i32
    return %arg0, %arg1 : i32, i32
  }
  func.func @transform_2(%arg0: i32, %arg1: i32) -> (i32, i32) {
    %c0_i32 = arith.constant 0 : i32
    return %arg0, %arg1 : i32, i32
  }
}

module attributes {stable_mosaic.version = 11 : i64} {
  func.func @_gru_kernel(%arg0: i32, %arg1: i32, %arg2: i32, %arg3: memref<1x8x8x384xf32, #tpu.memory_space<vmem>>, %arg4: memref<1x128x384xf32, #tpu.memory_space<vmem>>, %arg5: memref<1x1x128xf32, #tpu.memory_space<vmem>>, %arg6: memref<8x128xf32, #tpu.memory_space<vmem>>, %arg7: memref<8x128xi32, #tpu.memory_space<vmem>>, %arg8: memref<8x8x128xf32, #tpu.memory_space<vmem>>, %arg9: memref<1x8x128xf32, #tpu.memory_space<vmem>>, %arg10: memref<8x128xf32, #tpu.memory_space<vmem>>) attributes {dimension_semantics = [#tpu.dimension_semantics<parallel>, #tpu.dimension_semantics<parallel>, #tpu.dimension_semantics<arbitrary>], iteration_bounds = array<i64: 2, 1, 1>, scalar_prefetch = 0 : i64, scratch_operands = 1 : i64, tpu.core_type = #tpu.core_type<tc>, window_params = [{transform_indices = @transform_0, window_bounds = array<i64: 1, 8, 8, 384>}, {transform_indices = @transform_1, window_bounds = array<i64: 1, 128, 384>}, {transform_indices = @transform_2, window_bounds = array<i64: 1, 1, 128>}, {transform_indices = @transform_3, window_bounds = array<i64: 8, 128>}, {transform_indices = @transform_4, window_bounds = array<i64: 8, 128>}, {transform_indices = @transform_5, window_bounds = array<i64: 8, 8, 128>}, {transform_indices = @transform_6, window_bounds = array<i64: 1, 8, 128>}]} {
    %c1_i32 = arith.constant 1 : i32
    %0 = arith.cmpi eq, %arg0, %c1_i32 : i32
    %c0_i32 = arith.constant 0 : i32
    %1 = arith.cmpi eq, %arg2, %c0_i32 : i32
    %2 = arith.extui %1 : i1 to i32
    %c0_i32_0 = arith.constant 0 : i32
    %3 = arith.cmpi ne, %2, %c0_i32_0 : i32
    scf.if %3 {
      %c0_103 = arith.constant 0 : index
      %c0_104 = arith.constant 0 : index
      %320 = vector.load %arg6[%c0_103, %c0_104] : memref<8x128xf32, #tpu.memory_space<vmem>>, vector<8x128xf32>
      %c0_105 = arith.constant 0 : index
      %c0_106 = arith.constant 0 : index
      %321 = vector.load %arg10[%c0_105, %c0_106] : memref<8x128xf32, #tpu.memory_space<vmem>>, vector<8x128xf32>
      tpu.vector_store %arg10[%c0_105, %c0_106], %320 {strides = array<i32>} : memref<8x128xf32, #tpu.memory_space<vmem>>, vector<8x128xf32>,
    } else {
    }
    %c0 = arith.constant 0 : index
    %c0_1 = arith.constant 0 : index
    %c0_2 = arith.constant 0 : index
    %4 = vector.load %arg4[%c0, %c0_1, %c0_2] : memref<1x128x384xf32, #tpu.memory_space<vmem>>, vector<1x128x384xf32>
    %5 = vector.shape_cast %4 : vector<1x128x384xf32> to vector<128x384xf32>
    %c0_3 = arith.constant 0 : index
    %c0_4 = arith.constant 0 : index
    %c0_5 = arith.constant 0 : index
    %6 = vector.load %arg5[%c0_3, %c0_4, %c0_5] : memref<1x1x128xf32, #tpu.memory_space<vmem>>, vector<1x1x128xf32>
    %7 = vector.shape_cast %6 : vector<1x1x128xf32> to vector<1x128xf32>
    %c0_6 = arith.constant 0 : index
    %c0_7 = arith.constant 0 : index
    %8 = vector.load %arg7[%c0_6, %c0_7] : memref<8x128xi32, #tpu.memory_space<vmem>>, vector<8x1xi32>
    %9 = vector.shape_cast %8 : vector<8x1xi32> to vector<8x1xi32>
    %10 = vector.broadcast %9 : vector<8x1xi32> to vector<8x128xi32>
    %c8_i32 = arith.constant 8 : i32
    %11 = arith.muli %arg2, %c8_i32 : i32
    %c0_i32_8 = arith.constant 0 : i32
    %c0_9 = arith.constant 0 : index
    %c0_10 = arith.constant 0 : index
    %12 = vector.load %arg10[%c0_9, %c0_10] : memref<8x128xf32, #tpu.memory_space<vmem>>, vector<8x128xf32>
    %cst = arith.constant dense<0.000000e+00> : vector<8x384xf32>
    %13 = tpu.matmul %12, %5, %cst {dimension_numbers = #tpu.dot_dimension_numbers<[1], [0], [0], [1], [0, 0, 1, 1], [], []>} : vector<8x128xf32>, vector<128x384xf32>, vector<8x384xf32> -> vector<8x384xf32>
    %c0_11 = arith.constant 0 : index
    %14 = arith.index_cast %c0_i32_8 : i32 to index
    %c0_12 = arith.constant 0 : index
    %c0_13 = arith.constant 0 : index
    %15 = vector.load %arg3[%c0_11, %14, %c0_12, %c0_13] : memref<1x8x8x384xf32, #tpu.memory_space<vmem>>, vector<1x1x8x384xf32>
    %16 = vector.shape_cast %15 : vector<1x1x8x384xf32> to vector<8x384xf32>
    %17 = vector.extract_strided_slice %16 {offsets = [0, 0], sizes = [8, 128], strides = [1, 1]} : vector<8x384xf32> to vector<8x128xf32>
    %18 = vector.extract_strided_slice %13 {offsets = [0, 0], sizes = [8, 128], strides = [1, 1]} : vector<8x384xf32> to vector<8x128xf32>
    %19 = arith.addf %17, %18 : vector<8x128xf32>
    %20 = arith.negf %19 : vector<8x128xf32>
    %21 = math.exp %20 : vector<8x128xf32>
    %cst_14 = arith.constant 1.000000e+00 : f32
    %22 = vector.broadcast %cst_14 : f32 to vector<8x128xf32>
    %23 = arith.addf %22, %21 : vector<8x128xf32>
    %24 = arith.divf %22, %23 : vector<8x128xf32>
    %25 = vector.extract_strided_slice %16 {offsets = [0, 128], sizes = [8, 128], strides = [1, 1]} : vector<8x384xf32> to vector<8x128xf32>
    %26 = vector.extract_strided_slice %13 {offsets = [0, 128], sizes = [8, 128], strides = [1, 1]} : vector<8x384xf32> to vector<8x128xf32>
    %27 = arith.addf %25, %26 : vector<8x128xf32>
    %28 = arith.negf %27 : vector<8x128xf32>
    %29 = math.exp %28 : vector<8x128xf32>
    %cst_15 = arith.constant 1.000000e+00 : f32
    %30 = vector.broadcast %cst_15 : f32 to vector<8x128xf32>
    %31 = arith.addf %30, %29 : vector<8x128xf32>
    %32 = arith.divf %30, %31 : vector<8x128xf32>
    %33 = vector.extract_strided_slice %16 {offsets = [0, 256], sizes = [8, 128], strides = [1, 1]} : vector<8x384xf32> to vector<8x128xf32>
    %34 = vector.extract_strided_slice %13 {offsets = [0, 256], sizes = [8, 128], strides = [1, 1]} : vector<8x384xf32> to vector<8x128xf32>
    %35 = vector.broadcast %7 : vector<1x128xf32> to vector<8x128xf32>
    %36 = arith.addf %34, %35 : vector<8x128xf32>
    %37 = arith.mulf %24, %36 : vector<8x128xf32>
    %38 = arith.addf %33, %37 : vector<8x128xf32>
    %39 = math.tanh %38 : vector<8x128xf32>
    %40 = arith.subf %12, %39 : vector<8x128xf32>
    %41 = arith.mulf %32, %40 : vector<8x128xf32>
    %42 = arith.addf %39, %41 : vector<8x128xf32>
    %43 = arith.addi %11, %c0_i32_8 : i32
    %44 = vector.broadcast %43 : i32 to vector<8x128xi32>
    %45 = arith.cmpi slt, %44, %10 : vector<8x128xi32>
    %46 = arith.select %45, %42, %12 : vector<8x128xi1>, vector<8x128xf32>
    %47 = arith.extui %0 : i1 to i32
    %c0_i32_16 = arith.constant 0 : i32
    %48 = arith.cmpi ne, %47, %c0_i32_16 : i32
    scf.if %48 {
      %320 = arith.index_cast %c0_i32_8 : i32 to index
      %c0_103 = arith.constant 0 : index
      %c0_104 = arith.constant 0 : index
      %321 = vector.load %arg8[%320, %c0_103, %c0_104] : memref<8x8x128xf32, #tpu.memory_space<vmem>>, vector<1x8x128xf32>
      %322 = vector.shape_cast %321 : vector<1x8x128xf32> to vector<8x128xf32>
      %323 = vector.shape_cast %46 : vector<8x128xf32> to vector<1x8x128xf32>
      tpu.vector_store %arg8[%320, %c0_103, %c0_104], %323 {strides = array<i32>} : memref<8x8x128xf32, #tpu.memory_space<vmem>>, vector<1x8x128xf32>,
    } else {
    }
    %c0_17 = arith.constant 0 : index
    %c0_18 = arith.constant 0 : index
    %49 = vector.load %arg10[%c0_17, %c0_18] : memref<8x128xf32, #tpu.memory_space<vmem>>, vector<8x128xf32>
    tpu.vector_store %arg10[%c0_17, %c0_18], %46 {strides = array<i32>} : memref<8x128xf32, #tpu.memory_space<vmem>>, vector<8x128xf32>,
    %c1_i32_19 = arith.constant 1 : i32
    %c0_20 = arith.constant 0 : index
    %c0_21 = arith.constant 0 : index
    %50 = vector.load %arg10[%c0_20, %c0_21] : memref<8x128xf32, #tpu.memory_space<vmem>>, vector<8x128xf32>
    %cst_22 = arith.constant dense<0.000000e+00> : vector<8x384xf32>
    %51 = tpu.matmul %50, %5, %cst_22 {dimension_numbers = #tpu.dot_dimension_numbers<[1], [0], [0], [1], [0, 0, 1, 1], [], []>} : vector<8x128xf32>, vector<128x384xf32>, vector<8x384xf32> -> vector<8x384xf32>
    %c0_23 = arith.constant 0 : index
    %52 = arith.index_cast %c1_i32_19 : i32 to index
    %c0_24 = arith.constant 0 : index
    %c0_25 = arith.constant 0 : index
    %53 = vector.load %arg3[%c0_23, %52, %c0_24, %c0_25] : memref<1x8x8x384xf32, #tpu.memory_space<vmem>>, vector<1x1x8x384xf32>
    %54 = vector.shape_cast %53 : vector<1x1x8x384xf32> to vector<8x384xf32>
    %55 = vector.extract_strided_slice %54 {offsets = [0, 0], sizes = [8, 128], strides = [1, 1]} : vector<8x384xf32> to vector<8x128xf32>
    %56 = vector.extract_strided_slice %51 {offsets = [0, 0], sizes = [8, 128], strides = [1, 1]} : vector<8x384xf32> to vector<8x128xf32>
    %57 = arith.addf %55, %56 : vector<8x128xf32>
    %58 = arith.negf %57 : vector<8x128xf32>
    %59 = math.exp %58 : vector<8x128xf32>
    %cst_26 = arith.constant 1.000000e+00 : f32
    %60 = vector.broadcast %cst_26 : f32 to vector<8x128xf32>
    %61 = arith.addf %60, %59 : vector<8x128xf32>
    %62 = arith.divf %60, %61 : vector<8x128xf32>
    %63 = vector.extract_strided_slice %54 {offsets = [0, 128], sizes = [8, 128], strides = [1, 1]} : vector<8x384xf32> to vector<8x128xf32>
    %64 = vector.extract_strided_slice %51 {offsets = [0, 128], sizes = [8, 128], strides = [1, 1]} : vector<8x384xf32> to vector<8x128xf32>
    %65 = arith.addf %63, %64 : vector<8x128xf32>
    %66 = arith.negf %65 : vector<8x128xf32>
    %67 = math.exp %66 : vector<8x128xf32>
    %cst_27 = arith.constant 1.000000e+00 : f32
    %68 = vector.broadcast %cst_27 : f32 to vector<8x128xf32>
    %69 = arith.addf %68, %67 : vector<8x128xf32>
    %70 = arith.divf %68, %69 : vector<8x128xf32>
    %71 = vector.extract_strided_slice %54 {offsets = [0, 256], sizes = [8, 128], strides = [1, 1]} : vector<8x384xf32> to vector<8x128xf32>
    %72 = vector.extract_strided_slice %51 {offsets = [0, 256], sizes = [8, 128], strides = [1, 1]} : vector<8x384xf32> to vector<8x128xf32>
    %73 = vector.broadcast %7 : vector<1x128xf32> to vector<8x128xf32>
    %74 = arith.addf %72, %73 : vector<8x128xf32>
    %75 = arith.mulf %62, %74 : vector<8x128xf32>
    %76 = arith.addf %71, %75 : vector<8x128xf32>
    %77 = math.tanh %76 : vector<8x128xf32>
    %78 = arith.subf %50, %77 : vector<8x128xf32>
    %79 = arith.mulf %70, %78 : vector<8x128xf32>
    %80 = arith.addf %77, %79 : vector<8x128xf32>
    %81 = arith.addi %11, %c1_i32_19 : i32
    %82 = vector.broadcast %81 : i32 to vector<8x128xi32>
    %83 = arith.cmpi slt, %82, %10 : vector<8x128xi32>
    %84 = arith.select %83, %80, %50 : vector<8x128xi1>, vector<8x128xf32>
    %85 = arith.extui %0 : i1 to i32
    %c0_i32_28 = arith.constant 0 : i32
    %86 = arith.cmpi ne, %85, %c0_i32_28 : i32
    scf.if %86 {
      %320 = arith.index_cast %c1_i32_19 : i32 to index
      %c0_103 = arith.constant 0 : index
      %c0_104 = arith.constant 0 : index
      %321 = vector.load %arg8[%320, %c0_103, %c0_104] : memref<8x8x128xf32, #tpu.memory_space<vmem>>, vector<1x8x128xf32>
      %322 = vector.shape_cast %321 : vector<1x8x128xf32> to vector<8x128xf32>
      %323 = vector.shape_cast %84 : vector<8x128xf32> to vector<1x8x128xf32>
      tpu.vector_store %arg8[%320, %c0_103, %c0_104], %323 {strides = array<i32>} : memref<8x8x128xf32, #tpu.memory_space<vmem>>, vector<1x8x128xf32>,
    } else {
    }
    %c0_29 = arith.constant 0 : index
    %c0_30 = arith.constant 0 : index
    %87 = vector.load %arg10[%c0_29, %c0_30] : memref<8x128xf32, #tpu.memory_space<vmem>>, vector<8x128xf32>
    tpu.vector_store %arg10[%c0_29, %c0_30], %84 {strides = array<i32>} : memref<8x128xf32, #tpu.memory_space<vmem>>, vector<8x128xf32>,
    %c2_i32 = arith.constant 2 : i32
    %c0_31 = arith.constant 0 : index
    %c0_32 = arith.constant 0 : index
    %88 = vector.load %arg10[%c0_31, %c0_32] : memref<8x128xf32, #tpu.memory_space<vmem>>, vector<8x128xf32>
    %cst_33 = arith.constant dense<0.000000e+00> : vector<8x384xf32>
    %89 = tpu.matmul %88, %5, %cst_33 {dimension_numbers = #tpu.dot_dimension_numbers<[1], [0], [0], [1], [0, 0, 1, 1], [], []>} : vector<8x128xf32>, vector<128x384xf32>, vector<8x384xf32> -> vector<8x384xf32>
    %c0_34 = arith.constant 0 : index
    %90 = arith.index_cast %c2_i32 : i32 to index
    %c0_35 = arith.constant 0 : index
    %c0_36 = arith.constant 0 : index
    %91 = vector.load %arg3[%c0_34, %90, %c0_35, %c0_36] : memref<1x8x8x384xf32, #tpu.memory_space<vmem>>, vector<1x1x8x384xf32>
    %92 = vector.shape_cast %91 : vector<1x1x8x384xf32> to vector<8x384xf32>
    %93 = vector.extract_strided_slice %92 {offsets = [0, 0], sizes = [8, 128], strides = [1, 1]} : vector<8x384xf32> to vector<8x128xf32>
    %94 = vector.extract_strided_slice %89 {offsets = [0, 0], sizes = [8, 128], strides = [1, 1]} : vector<8x384xf32> to vector<8x128xf32>
    %95 = arith.addf %93, %94 : vector<8x128xf32>
    %96 = arith.negf %95 : vector<8x128xf32>
    %97 = math.exp %96 : vector<8x128xf32>
    %cst_37 = arith.constant 1.000000e+00 : f32
    %98 = vector.broadcast %cst_37 : f32 to vector<8x128xf32>
    %99 = arith.addf %98, %97 : vector<8x128xf32>
    %100 = arith.divf %98, %99 : vector<8x128xf32>
    %101 = vector.extract_strided_slice %92 {offsets = [0, 128], sizes = [8, 128], strides = [1, 1]} : vector<8x384xf32> to vector<8x128xf32>
    %102 = vector.extract_strided_slice %89 {offsets = [0, 128], sizes = [8, 128], strides = [1, 1]} : vector<8x384xf32> to vector<8x128xf32>
    %103 = arith.addf %101, %102 : vector<8x128xf32>
    %104 = arith.negf %103 : vector<8x128xf32>
    %105 = math.exp %104 : vector<8x128xf32>
    %cst_38 = arith.constant 1.000000e+00 : f32
    %106 = vector.broadcast %cst_38 : f32 to vector<8x128xf32>
    %107 = arith.addf %106, %105 : vector<8x128xf32>
    %108 = arith.divf %106, %107 : vector<8x128xf32>
    %109 = vector.extract_strided_slice %92 {offsets = [0, 256], sizes = [8, 128], strides = [1, 1]} : vector<8x384xf32> to vector<8x128xf32>
    %110 = vector.extract_strided_slice %89 {offsets = [0, 256], sizes = [8, 128], strides = [1, 1]} : vector<8x384xf32> to vector<8x128xf32>
    %111 = vector.broadcast %7 : vector<1x128xf32> to vector<8x128xf32>
    %112 = arith.addf %110, %111 : vector<8x128xf32>
    %113 = arith.mulf %100, %112 : vector<8x128xf32>
    %114 = arith.addf %109, %113 : vector<8x128xf32>
    %115 = math.tanh %114 : vector<8x128xf32>
    %116 = arith.subf %88, %115 : vector<8x128xf32>
    %117 = arith.mulf %108, %116 : vector<8x128xf32>
    %118 = arith.addf %115, %117 : vector<8x128xf32>
    %119 = arith.addi %11, %c2_i32 : i32
    %120 = vector.broadcast %119 : i32 to vector<8x128xi32>
    %121 = arith.cmpi slt, %120, %10 : vector<8x128xi32>
    %122 = arith.select %121, %118, %88 : vector<8x128xi1>, vector<8x128xf32>
    %123 = arith.extui %0 : i1 to i32
    %c0_i32_39 = arith.constant 0 : i32
    %124 = arith.cmpi ne, %123, %c0_i32_39 : i32
    scf.if %124 {
      %320 = arith.index_cast %c2_i32 : i32 to index
      %c0_103 = arith.constant 0 : index
      %c0_104 = arith.constant 0 : index
      %321 = vector.load %arg8[%320, %c0_103, %c0_104] : memref<8x8x128xf32, #tpu.memory_space<vmem>>, vector<1x8x128xf32>
      %322 = vector.shape_cast %321 : vector<1x8x128xf32> to vector<8x128xf32>
      %323 = vector.shape_cast %122 : vector<8x128xf32> to vector<1x8x128xf32>
      tpu.vector_store %arg8[%320, %c0_103, %c0_104], %323 {strides = array<i32>} : memref<8x8x128xf32, #tpu.memory_space<vmem>>, vector<1x8x128xf32>,
    } else {
    }
    %c0_40 = arith.constant 0 : index
    %c0_41 = arith.constant 0 : index
    %125 = vector.load %arg10[%c0_40, %c0_41] : memref<8x128xf32, #tpu.memory_space<vmem>>, vector<8x128xf32>
    tpu.vector_store %arg10[%c0_40, %c0_41], %122 {strides = array<i32>} : memref<8x128xf32, #tpu.memory_space<vmem>>, vector<8x128xf32>,
    %c3_i32 = arith.constant 3 : i32
    %c0_42 = arith.constant 0 : index
    %c0_43 = arith.constant 0 : index
    %126 = vector.load %arg10[%c0_42, %c0_43] : memref<8x128xf32, #tpu.memory_space<vmem>>, vector<8x128xf32>
    %cst_44 = arith.constant dense<0.000000e+00> : vector<8x384xf32>
    %127 = tpu.matmul %126, %5, %cst_44 {dimension_numbers = #tpu.dot_dimension_numbers<[1], [0], [0], [1], [0, 0, 1, 1], [], []>} : vector<8x128xf32>, vector<128x384xf32>, vector<8x384xf32> -> vector<8x384xf32>
    %c0_45 = arith.constant 0 : index
    %128 = arith.index_cast %c3_i32 : i32 to index
    %c0_46 = arith.constant 0 : index
    %c0_47 = arith.constant 0 : index
    %129 = vector.load %arg3[%c0_45, %128, %c0_46, %c0_47] : memref<1x8x8x384xf32, #tpu.memory_space<vmem>>, vector<1x1x8x384xf32>
    %130 = vector.shape_cast %129 : vector<1x1x8x384xf32> to vector<8x384xf32>
    %131 = vector.extract_strided_slice %130 {offsets = [0, 0], sizes = [8, 128], strides = [1, 1]} : vector<8x384xf32> to vector<8x128xf32>
    %132 = vector.extract_strided_slice %127 {offsets = [0, 0], sizes = [8, 128], strides = [1, 1]} : vector<8x384xf32> to vector<8x128xf32>
    %133 = arith.addf %131, %132 : vector<8x128xf32>
    %134 = arith.negf %133 : vector<8x128xf32>
    %135 = math.exp %134 : vector<8x128xf32>
    %cst_48 = arith.constant 1.000000e+00 : f32
    %136 = vector.broadcast %cst_48 : f32 to vector<8x128xf32>
    %137 = arith.addf %136, %135 : vector<8x128xf32>
    %138 = arith.divf %136, %137 : vector<8x128xf32>
    %139 = vector.extract_strided_slice %130 {offsets = [0, 128], sizes = [8, 128], strides = [1, 1]} : vector<8x384xf32> to vector<8x128xf32>
    %140 = vector.extract_strided_slice %127 {offsets = [0, 128], sizes = [8, 128], strides = [1, 1]} : vector<8x384xf32> to vector<8x128xf32>
    %141 = arith.addf %139, %140 : vector<8x128xf32>
    %142 = arith.negf %141 : vector<8x128xf32>
    %143 = math.exp %142 : vector<8x128xf32>
    %cst_49 = arith.constant 1.000000e+00 : f32
    %144 = vector.broadcast %cst_49 : f32 to vector<8x128xf32>
    %145 = arith.addf %144, %143 : vector<8x128xf32>
    %146 = arith.divf %144, %145 : vector<8x128xf32>
    %147 = vector.extract_strided_slice %130 {offsets = [0, 256], sizes = [8, 128], strides = [1, 1]} : vector<8x384xf32> to vector<8x128xf32>
    %148 = vector.extract_strided_slice %127 {offsets = [0, 256], sizes = [8, 128], strides = [1, 1]} : vector<8x384xf32> to vector<8x128xf32>
    %149 = vector.broadcast %7 : vector<1x128xf32> to vector<8x128xf32>
    %150 = arith.addf %148, %149 : vector<8x128xf32>
    %151 = arith.mulf %138, %150 : vector<8x128xf32>
    %152 = arith.addf %147, %151 : vector<8x128xf32>
    %153 = math.tanh %152 : vector<8x128xf32>
    %154 = arith.subf %126, %153 : vector<8x128xf32>
    %155 = arith.mulf %146, %154 : vector<8x128xf32>
    %156 = arith.addf %153, %155 : vector<8x128xf32>
    %157 = arith.addi %11, %c3_i32 : i32
    %158 = vector.broadcast %157 : i32 to vector<8x128xi32>
    %159 = arith.cmpi slt, %158, %10 : vector<8x128xi32>
    %160 = arith.select %159, %156, %126 : vector<8x128xi1>, vector<8x128xf32>
    %161 = arith.extui %0 : i1 to i32
    %c0_i32_50 = arith.constant 0 : i32
    %162 = arith.cmpi ne, %161, %c0_i32_50 : i32
    scf.if %162 {
      %320 = arith.index_cast %c3_i32 : i32 to index
      %c0_103 = arith.constant 0 : index
      %c0_104 = arith.constant 0 : index
      %321 = vector.load %arg8[%320, %c0_103, %c0_104] : memref<8x8x128xf32, #tpu.memory_space<vmem>>, vector<1x8x128xf32>
      %322 = vector.shape_cast %321 : vector<1x8x128xf32> to vector<8x128xf32>
      %323 = vector.shape_cast %160 : vector<8x128xf32> to vector<1x8x128xf32>
      tpu.vector_store %arg8[%320, %c0_103, %c0_104], %323 {strides = array<i32>} : memref<8x8x128xf32, #tpu.memory_space<vmem>>, vector<1x8x128xf32>,
    } else {
    }
    %c0_51 = arith.constant 0 : index
    %c0_52 = arith.constant 0 : index
    %163 = vector.load %arg10[%c0_51, %c0_52] : memref<8x128xf32, #tpu.memory_space<vmem>>, vector<8x128xf32>
    tpu.vector_store %arg10[%c0_51, %c0_52], %160 {strides = array<i32>} : memref<8x128xf32, #tpu.memory_space<vmem>>, vector<8x128xf32>,
    %c4_i32 = arith.constant 4 : i32
    %c0_53 = arith.constant 0 : index
    %c0_54 = arith.constant 0 : index
    %164 = vector.load %arg10[%c0_53, %c0_54] : memref<8x128xf32, #tpu.memory_space<vmem>>, vector<8x128xf32>
    %cst_55 = arith.constant dense<0.000000e+00> : vector<8x384xf32>
    %165 = tpu.matmul %164, %5, %cst_55 {dimension_numbers = #tpu.dot_dimension_numbers<[1], [0], [0], [1], [0, 0, 1, 1], [], []>} : vector<8x128xf32>, vector<128x384xf32>, vector<8x384xf32> -> vector<8x384xf32>
    %c0_56 = arith.constant 0 : index
    %166 = arith.index_cast %c4_i32 : i32 to index
    %c0_57 = arith.constant 0 : index
    %c0_58 = arith.constant 0 : index
    %167 = vector.load %arg3[%c0_56, %166, %c0_57, %c0_58] : memref<1x8x8x384xf32, #tpu.memory_space<vmem>>, vector<1x1x8x384xf32>
    %168 = vector.shape_cast %167 : vector<1x1x8x384xf32> to vector<8x384xf32>
    %169 = vector.extract_strided_slice %168 {offsets = [0, 0], sizes = [8, 128], strides = [1, 1]} : vector<8x384xf32> to vector<8x128xf32>
    %170 = vector.extract_strided_slice %165 {offsets = [0, 0], sizes = [8, 128], strides = [1, 1]} : vector<8x384xf32> to vector<8x128xf32>
    %171 = arith.addf %169, %170 : vector<8x128xf32>
    %172 = arith.negf %171 : vector<8x128xf32>
    %173 = math.exp %172 : vector<8x128xf32>
    %cst_59 = arith.constant 1.000000e+00 : f32
    %174 = vector.broadcast %cst_59 : f32 to vector<8x128xf32>
    %175 = arith.addf %174, %173 : vector<8x128xf32>
    %176 = arith.divf %174, %175 : vector<8x128xf32>
    %177 = vector.extract_strided_slice %168 {offsets = [0, 128], sizes = [8, 128], strides = [1, 1]} : vector<8x384xf32> to vector<8x128xf32>
    %178 = vector.extract_strided_slice %165 {offsets = [0, 128], sizes = [8, 128], strides = [1, 1]} : vector<8x384xf32> to vector<8x128xf32>
    %179 = arith.addf %177, %178 : vector<8x128xf32>
    %180 = arith.negf %179 : vector<8x128xf32>
    %181 = math.exp %180 : vector<8x128xf32>
    %cst_60 = arith.constant 1.000000e+00 : f32
    %182 = vector.broadcast %cst_60 : f32 to vector<8x128xf32>
    %183 = arith.addf %182, %181 : vector<8x128xf32>
    %184 = arith.divf %182, %183 : vector<8x128xf32>
    %185 = vector.extract_strided_slice %168 {offsets = [0, 256], sizes = [8, 128], strides = [1, 1]} : vector<8x384xf32> to vector<8x128xf32>
    %186 = vector.extract_strided_slice %165 {offsets = [0, 256], sizes = [8, 128], strides = [1, 1]} : vector<8x384xf32> to vector<8x128xf32>
    %187 = vector.broadcast %7 : vector<1x128xf32> to vector<8x128xf32>
    %188 = arith.addf %186, %187 : vector<8x128xf32>
    %189 = arith.mulf %176, %188 : vector<8x128xf32>
    %190 = arith.addf %185, %189 : vector<8x128xf32>
    %191 = math.tanh %190 : vector<8x128xf32>
    %192 = arith.subf %164, %191 : vector<8x128xf32>
    %193 = arith.mulf %184, %192 : vector<8x128xf32>
    %194 = arith.addf %191, %193 : vector<8x128xf32>
    %195 = arith.addi %11, %c4_i32 : i32
    %196 = vector.broadcast %195 : i32 to vector<8x128xi32>
    %197 = arith.cmpi slt, %196, %10 : vector<8x128xi32>
    %198 = arith.select %197, %194, %164 : vector<8x128xi1>, vector<8x128xf32>
    %199 = arith.extui %0 : i1 to i32
    %c0_i32_61 = arith.constant 0 : i32
    %200 = arith.cmpi ne, %199, %c0_i32_61 : i32
    scf.if %200 {
      %320 = arith.index_cast %c4_i32 : i32 to index
      %c0_103 = arith.constant 0 : index
      %c0_104 = arith.constant 0 : index
      %321 = vector.load %arg8[%320, %c0_103, %c0_104] : memref<8x8x128xf32, #tpu.memory_space<vmem>>, vector<1x8x128xf32>
      %322 = vector.shape_cast %321 : vector<1x8x128xf32> to vector<8x128xf32>
      %323 = vector.shape_cast %198 : vector<8x128xf32> to vector<1x8x128xf32>
      tpu.vector_store %arg8[%320, %c0_103, %c0_104], %323 {strides = array<i32>} : memref<8x8x128xf32, #tpu.memory_space<vmem>>, vector<1x8x128xf32>,
    } else {
    }
    %c0_62 = arith.constant 0 : index
    %c0_63 = arith.constant 0 : index
    %201 = vector.load %arg10[%c0_62, %c0_63] : memref<8x128xf32, #tpu.memory_space<vmem>>, vector<8x128xf32>
    tpu.vector_store %arg10[%c0_62, %c0_63], %198 {strides = array<i32>} : memref<8x128xf32, #tpu.memory_space<vmem>>, vector<8x128xf32>,
    %c5_i32 = arith.constant 5 : i32
    %c0_64 = arith.constant 0 : index
    %c0_65 = arith.constant 0 : index
    %202 = vector.load %arg10[%c0_64, %c0_65] : memref<8x128xf32, #tpu.memory_space<vmem>>, vector<8x128xf32>
    %cst_66 = arith.constant dense<0.000000e+00> : vector<8x384xf32>
    %203 = tpu.matmul %202, %5, %cst_66 {dimension_numbers = #tpu.dot_dimension_numbers<[1], [0], [0], [1], [0, 0, 1, 1], [], []>} : vector<8x128xf32>, vector<128x384xf32>, vector<8x384xf32> -> vector<8x384xf32>
    %c0_67 = arith.constant 0 : index
    %204 = arith.index_cast %c5_i32 : i32 to index
    %c0_68 = arith.constant 0 : index
    %c0_69 = arith.constant 0 : index
    %205 = vector.load %arg3[%c0_67, %204, %c0_68, %c0_69] : memref<1x8x8x384xf32, #tpu.memory_space<vmem>>, vector<1x1x8x384xf32>
    %206 = vector.shape_cast %205 : vector<1x1x8x384xf32> to vector<8x384xf32>
    %207 = vector.extract_strided_slice %206 {offsets = [0, 0], sizes = [8, 128], strides = [1, 1]} : vector<8x384xf32> to vector<8x128xf32>
    %208 = vector.extract_strided_slice %203 {offsets = [0, 0], sizes = [8, 128], strides = [1, 1]} : vector<8x384xf32> to vector<8x128xf32>
    %209 = arith.addf %207, %208 : vector<8x128xf32>
    %210 = arith.negf %209 : vector<8x128xf32>
    %211 = math.exp %210 : vector<8x128xf32>
    %cst_70 = arith.constant 1.000000e+00 : f32
    %212 = vector.broadcast %cst_70 : f32 to vector<8x128xf32>
    %213 = arith.addf %212, %211 : vector<8x128xf32>
    %214 = arith.divf %212, %213 : vector<8x128xf32>
    %215 = vector.extract_strided_slice %206 {offsets = [0, 128], sizes = [8, 128], strides = [1, 1]} : vector<8x384xf32> to vector<8x128xf32>
    %216 = vector.extract_strided_slice %203 {offsets = [0, 128], sizes = [8, 128], strides = [1, 1]} : vector<8x384xf32> to vector<8x128xf32>
    %217 = arith.addf %215, %216 : vector<8x128xf32>
    %218 = arith.negf %217 : vector<8x128xf32>
    %219 = math.exp %218 : vector<8x128xf32>
    %cst_71 = arith.constant 1.000000e+00 : f32
    %220 = vector.broadcast %cst_71 : f32 to vector<8x128xf32>
    %221 = arith.addf %220, %219 : vector<8x128xf32>
    %222 = arith.divf %220, %221 : vector<8x128xf32>
    %223 = vector.extract_strided_slice %206 {offsets = [0, 256], sizes = [8, 128], strides = [1, 1]} : vector<8x384xf32> to vector<8x128xf32>
    %224 = vector.extract_strided_slice %203 {offsets = [0, 256], sizes = [8, 128], strides = [1, 1]} : vector<8x384xf32> to vector<8x128xf32>
    %225 = vector.broadcast %7 : vector<1x128xf32> to vector<8x128xf32>
    %226 = arith.addf %224, %225 : vector<8x128xf32>
    %227 = arith.mulf %214, %226 : vector<8x128xf32>
    %228 = arith.addf %223, %227 : vector<8x128xf32>
    %229 = math.tanh %228 : vector<8x128xf32>
    %230 = arith.subf %202, %229 : vector<8x128xf32>
    %231 = arith.mulf %222, %230 : vector<8x128xf32>
    %232 = arith.addf %229, %231 : vector<8x128xf32>
    %233 = arith.addi %11, %c5_i32 : i32
    %234 = vector.broadcast %233 : i32 to vector<8x128xi32>
    %235 = arith.cmpi slt, %234, %10 : vector<8x128xi32>
    %236 = arith.select %235, %232, %202 : vector<8x128xi1>, vector<8x128xf32>
    %237 = arith.extui %0 : i1 to i32
    %c0_i32_72 = arith.constant 0 : i32
    %238 = arith.cmpi ne, %237, %c0_i32_72 : i32
    scf.if %238 {
      %320 = arith.index_cast %c5_i32 : i32 to index
      %c0_103 = arith.constant 0 : index
      %c0_104 = arith.constant 0 : index
      %321 = vector.load %arg8[%320, %c0_103, %c0_104] : memref<8x8x128xf32, #tpu.memory_space<vmem>>, vector<1x8x128xf32>
      %322 = vector.shape_cast %321 : vector<1x8x128xf32> to vector<8x128xf32>
      %323 = vector.shape_cast %236 : vector<8x128xf32> to vector<1x8x128xf32>
      tpu.vector_store %arg8[%320, %c0_103, %c0_104], %323 {strides = array<i32>} : memref<8x8x128xf32, #tpu.memory_space<vmem>>, vector<1x8x128xf32>,
    } else {
    }
    %c0_73 = arith.constant 0 : index
    %c0_74 = arith.constant 0 : index
    %239 = vector.load %arg10[%c0_73, %c0_74] : memref<8x128xf32, #tpu.memory_space<vmem>>, vector<8x128xf32>
    tpu.vector_store %arg10[%c0_73, %c0_74], %236 {strides = array<i32>} : memref<8x128xf32, #tpu.memory_space<vmem>>, vector<8x128xf32>,
    %c6_i32 = arith.constant 6 : i32
    %c0_75 = arith.constant 0 : index
    %c0_76 = arith.constant 0 : index
    %240 = vector.load %arg10[%c0_75, %c0_76] : memref<8x128xf32, #tpu.memory_space<vmem>>, vector<8x128xf32>
    %cst_77 = arith.constant dense<0.000000e+00> : vector<8x384xf32>
    %241 = tpu.matmul %240, %5, %cst_77 {dimension_numbers = #tpu.dot_dimension_numbers<[1], [0], [0], [1], [0, 0, 1, 1], [], []>} : vector<8x128xf32>, vector<128x384xf32>, vector<8x384xf32> -> vector<8x384xf32>
    %c0_78 = arith.constant 0 : index
    %242 = arith.index_cast %c6_i32 : i32 to index
    %c0_79 = arith.constant 0 : index
    %c0_80 = arith.constant 0 : index
    %243 = vector.load %arg3[%c0_78, %242, %c0_79, %c0_80] : memref<1x8x8x384xf32, #tpu.memory_space<vmem>>, vector<1x1x8x384xf32>
    %244 = vector.shape_cast %243 : vector<1x1x8x384xf32> to vector<8x384xf32>
    %245 = vector.extract_strided_slice %244 {offsets = [0, 0], sizes = [8, 128], strides = [1, 1]} : vector<8x384xf32> to vector<8x128xf32>
    %246 = vector.extract_strided_slice %241 {offsets = [0, 0], sizes = [8, 128], strides = [1, 1]} : vector<8x384xf32> to vector<8x128xf32>
    %247 = arith.addf %245, %246 : vector<8x128xf32>
    %248 = arith.negf %247 : vector<8x128xf32>
    %249 = math.exp %248 : vector<8x128xf32>
    %cst_81 = arith.constant 1.000000e+00 : f32
    %250 = vector.broadcast %cst_81 : f32 to vector<8x128xf32>
    %251 = arith.addf %250, %249 : vector<8x128xf32>
    %252 = arith.divf %250, %251 : vector<8x128xf32>
    %253 = vector.extract_strided_slice %244 {offsets = [0, 128], sizes = [8, 128], strides = [1, 1]} : vector<8x384xf32> to vector<8x128xf32>
    %254 = vector.extract_strided_slice %241 {offsets = [0, 128], sizes = [8, 128], strides = [1, 1]} : vector<8x384xf32> to vector<8x128xf32>
    %255 = arith.addf %253, %254 : vector<8x128xf32>
    %256 = arith.negf %255 : vector<8x128xf32>
    %257 = math.exp %256 : vector<8x128xf32>
    %cst_82 = arith.constant 1.000000e+00 : f32
    %258 = vector.broadcast %cst_82 : f32 to vector<8x128xf32>
    %259 = arith.addf %258, %257 : vector<8x128xf32>
    %260 = arith.divf %258, %259 : vector<8x128xf32>
    %261 = vector.extract_strided_slice %244 {offsets = [0, 256], sizes = [8, 128], strides = [1, 1]} : vector<8x384xf32> to vector<8x128xf32>
    %262 = vector.extract_strided_slice %241 {offsets = [0, 256], sizes = [8, 128], strides = [1, 1]} : vector<8x384xf32> to vector<8x128xf32>
    %263 = vector.broadcast %7 : vector<1x128xf32> to vector<8x128xf32>
    %264 = arith.addf %262, %263 : vector<8x128xf32>
    %265 = arith.mulf %252, %264 : vector<8x128xf32>
    %266 = arith.addf %261, %265 : vector<8x128xf32>
    %267 = math.tanh %266 : vector<8x128xf32>
    %268 = arith.subf %240, %267 : vector<8x128xf32>
    %269 = arith.mulf %260, %268 : vector<8x128xf32>
    %270 = arith.addf %267, %269 : vector<8x128xf32>
    %271 = arith.addi %11, %c6_i32 : i32
    %272 = vector.broadcast %271 : i32 to vector<8x128xi32>
    %273 = arith.cmpi slt, %272, %10 : vector<8x128xi32>
    %274 = arith.select %273, %270, %240 : vector<8x128xi1>, vector<8x128xf32>
    %275 = arith.extui %0 : i1 to i32
    %c0_i32_83 = arith.constant 0 : i32
    %276 = arith.cmpi ne, %275, %c0_i32_83 : i32
    scf.if %276 {
      %320 = arith.index_cast %c6_i32 : i32 to index
      %c0_103 = arith.constant 0 : index
      %c0_104 = arith.constant 0 : index
      %321 = vector.load %arg8[%320, %c0_103, %c0_104] : memref<8x8x128xf32, #tpu.memory_space<vmem>>, vector<1x8x128xf32>
      %322 = vector.shape_cast %321 : vector<1x8x128xf32> to vector<8x128xf32>
      %323 = vector.shape_cast %274 : vector<8x128xf32> to vector<1x8x128xf32>
      tpu.vector_store %arg8[%320, %c0_103, %c0_104], %323 {strides = array<i32>} : memref<8x8x128xf32, #tpu.memory_space<vmem>>, vector<1x8x128xf32>,
    } else {
    }
    %c0_84 = arith.constant 0 : index
    %c0_85 = arith.constant 0 : index
    %277 = vector.load %arg10[%c0_84, %c0_85] : memref<8x128xf32, #tpu.memory_space<vmem>>, vector<8x128xf32>
    tpu.vector_store %arg10[%c0_84, %c0_85], %274 {strides = array<i32>} : memref<8x128xf32, #tpu.memory_space<vmem>>, vector<8x128xf32>,
    %c7_i32 = arith.constant 7 : i32
    %c0_86 = arith.constant 0 : index
    %c0_87 = arith.constant 0 : index
    %278 = vector.load %arg10[%c0_86, %c0_87] : memref<8x128xf32, #tpu.memory_space<vmem>>, vector<8x128xf32>
    %cst_88 = arith.constant dense<0.000000e+00> : vector<8x384xf32>
    %279 = tpu.matmul %278, %5, %cst_88 {dimension_numbers = #tpu.dot_dimension_numbers<[1], [0], [0], [1], [0, 0, 1, 1], [], []>} : vector<8x128xf32>, vector<128x384xf32>, vector<8x384xf32> -> vector<8x384xf32>
    %c0_89 = arith.constant 0 : index
    %280 = arith.index_cast %c7_i32 : i32 to index
    %c0_90 = arith.constant 0 : index
    %c0_91 = arith.constant 0 : index
    %281 = vector.load %arg3[%c0_89, %280, %c0_90, %c0_91] : memref<1x8x8x384xf32, #tpu.memory_space<vmem>>, vector<1x1x8x384xf32>
    %282 = vector.shape_cast %281 : vector<1x1x8x384xf32> to vector<8x384xf32>
    %283 = vector.extract_strided_slice %282 {offsets = [0, 0], sizes = [8, 128], strides = [1, 1]} : vector<8x384xf32> to vector<8x128xf32>
    %284 = vector.extract_strided_slice %279 {offsets = [0, 0], sizes = [8, 128], strides = [1, 1]} : vector<8x384xf32> to vector<8x128xf32>
    %285 = arith.addf %283, %284 : vector<8x128xf32>
    %286 = arith.negf %285 : vector<8x128xf32>
    %287 = math.exp %286 : vector<8x128xf32>
    %cst_92 = arith.constant 1.000000e+00 : f32
    %288 = vector.broadcast %cst_92 : f32 to vector<8x128xf32>
    %289 = arith.addf %288, %287 : vector<8x128xf32>
    %290 = arith.divf %288, %289 : vector<8x128xf32>
    %291 = vector.extract_strided_slice %282 {offsets = [0, 128], sizes = [8, 128], strides = [1, 1]} : vector<8x384xf32> to vector<8x128xf32>
    %292 = vector.extract_strided_slice %279 {offsets = [0, 128], sizes = [8, 128], strides = [1, 1]} : vector<8x384xf32> to vector<8x128xf32>
    %293 = arith.addf %291, %292 : vector<8x128xf32>
    %294 = arith.negf %293 : vector<8x128xf32>
    %295 = math.exp %294 : vector<8x128xf32>
    %cst_93 = arith.constant 1.000000e+00 : f32
    %296 = vector.broadcast %cst_93 : f32 to vector<8x128xf32>
    %297 = arith.addf %296, %295 : vector<8x128xf32>
    %298 = arith.divf %296, %297 : vector<8x128xf32>
    %299 = vector.extract_strided_slice %282 {offsets = [0, 256], sizes = [8, 128], strides = [1, 1]} : vector<8x384xf32> to vector<8x128xf32>
    %300 = vector.extract_strided_slice %279 {offsets = [0, 256], sizes = [8, 128], strides = [1, 1]} : vector<8x384xf32> to vector<8x128xf32>
    %301 = vector.broadcast %7 : vector<1x128xf32> to vector<8x128xf32>
    %302 = arith.addf %300, %301 : vector<8x128xf32>
    %303 = arith.mulf %290, %302 : vector<8x128xf32>
    %304 = arith.addf %299, %303 : vector<8x128xf32>
    %305 = math.tanh %304 : vector<8x128xf32>
    %306 = arith.subf %278, %305 : vector<8x128xf32>
    %307 = arith.mulf %298, %306 : vector<8x128xf32>
    %308 = arith.addf %305, %307 : vector<8x128xf32>
    %309 = arith.addi %11, %c7_i32 : i32
    %310 = vector.broadcast %309 : i32 to vector<8x128xi32>
    %311 = arith.cmpi slt, %310, %10 : vector<8x128xi32>
    %312 = arith.select %311, %308, %278 : vector<8x128xi1>, vector<8x128xf32>
    %313 = arith.extui %0 : i1 to i32
    %c0_i32_94 = arith.constant 0 : i32
    %314 = arith.cmpi ne, %313, %c0_i32_94 : i32
    scf.if %314 {
      %320 = arith.index_cast %c7_i32 : i32 to index
      %c0_103 = arith.constant 0 : index
      %c0_104 = arith.constant 0 : index
      %321 = vector.load %arg8[%320, %c0_103, %c0_104] : memref<8x8x128xf32, #tpu.memory_space<vmem>>, vector<1x8x128xf32>
      %322 = vector.shape_cast %321 : vector<1x8x128xf32> to vector<8x128xf32>
      %323 = vector.shape_cast %312 : vector<8x128xf32> to vector<1x8x128xf32>
      tpu.vector_store %arg8[%320, %c0_103, %c0_104], %323 {strides = array<i32>} : memref<8x8x128xf32, #tpu.memory_space<vmem>>, vector<1x8x128xf32>,
    } else {
    }
    %c0_95 = arith.constant 0 : index
    %c0_96 = arith.constant 0 : index
    %315 = vector.load %arg10[%c0_95, %c0_96] : memref<8x128xf32, #tpu.memory_space<vmem>>, vector<8x128xf32>
    tpu.vector_store %arg10[%c0_95, %c0_96], %312 {strides = array<i32>} : memref<8x128xf32, #tpu.memory_space<vmem>>, vector<8x128xf32>,
    %c8_i32_97 = arith.constant 8 : i32
    %c0_98 = arith.constant 0 : index
    %c0_99 = arith.constant 0 : index
    %316 = vector.load %arg10[%c0_98, %c0_99] : memref<8x128xf32, #tpu.memory_space<vmem>>, vector<8x128xf32>
    %c0_100 = arith.constant 0 : index
    %c0_101 = arith.constant 0 : index
    %c0_102 = arith.constant 0 : index
    %317 = vector.load %arg9[%c0_100, %c0_101, %c0_102] : memref<1x8x128xf32, #tpu.memory_space<vmem>>, vector<1x8x128xf32>
    %318 = vector.shape_cast %317 : vector<1x8x128xf32> to vector<8x128xf32>
    %319 = vector.shape_cast %316 : vector<8x128xf32> to vector<1x8x128xf32>
    tpu.vector_store %arg9[%c0_100, %c0_101, %c0_102], %319 {strides = array<i32>} : memref<1x8x128xf32, #tpu.memory_space<vmem>>, vector<1x8x128xf32>,
    return
  }
  func.func @transform_0(%arg0: i32, %arg1: i32, %arg2: i32) -> (i32, i32, i32, i32) {
    %c0_i32 = arith.constant 0 : i32
    %c0_i32_0 = arith.constant 0 : i32
    return %arg0, %arg2, %arg1, %c0_i32 : i32, i32, i32, i32
  }
  func.func @transform_1(%arg0: i32, %arg1: i32, %arg2: i32) -> (i32, i32, i32) {
    %c0_i32 = arith.constant 0 : i32
    %c0_i32_0 = arith.constant 0 : i32
    %c0_i32_1 = arith.constant 0 : i32
    return %arg0, %c0_i32, %c0_i32_0 : i32, i32, i32
  }
  func.func @transform_2(%arg0: i32, %arg1: i32, %arg2: i32) -> (i32, i32, i32) {
    %c0_i32 = arith.constant 0 : i32
    %c0_i32_0 = arith.constant 0 : i32
    %c0_i32_1 = arith.constant 0 : i32
    return %arg0, %c0_i32, %c0_i32_0 : i32, i32, i32
  }
  func.func @transform_3(%arg0: i32, %arg1: i32, %arg2: i32) -> (i32, i32) {
    %c0_i32 = arith.constant 0 : i32
    %c0_i32_0 = arith.constant 0 : i32
    return %arg1, %c0_i32 : i32, i32
  }
  func.func @transform_4(%arg0: i32, %arg1: i32, %arg2: i32) -> (i32, i32) {
    %c0_i32 = arith.constant 0 : i32
    %c0_i32_0 = arith.constant 0 : i32
    return %arg1, %c0_i32 : i32, i32
  }
  func.func @transform_5(%arg0: i32, %arg1: i32, %arg2: i32) -> (i32, i32, i32) {
    %c1_i32 = arith.constant 1 : i32
    %0 = arith.cmpi sge, %arg0, %c1_i32 : i32
    %1 = arith.extui %0 : i1 to i32
    %2 = arith.muli %1, %arg2 : i32
    %c1_i32_0 = arith.constant 1 : i32
    %3 = arith.subi %c1_i32_0, %1 : i32
    %c1_i32_1 = arith.constant 1 : i32
    %4 = arith.addi %c1_i32_1, %arg0 : i32
    %5 = arith.muli %3, %4 : i32
    %6 = arith.addi %2, %5 : i32
    %c0_i32 = arith.constant 0 : i32
    %c0_i32_2 = arith.constant 0 : i32
    return %6, %arg1, %c0_i32 : i32, i32, i32
  }
  func.func @transform_6(%arg0: i32, %arg1: i32, %arg2: i32) -> (i32, i32, i32) {
    %c0_i32 = arith.constant 0 : i32
    %c0_i32_0 = arith.constant 0 : i32
    return %arg0, %arg1, %c0_i32 : i32, i32, i32
  }
}

</mosaic_0001>

<bundles_post_ra>
// kernel: tpu_custom_call.1
= control target key start
LH: loop header
LB: loop body
LE: loop exit
PB: predicated region body
PF: predicated region fallthrough
CT: control target
= control target key end

     0   :  { %s864_s0 = inlined_call_operand.hbm [shape: f32[16,128], index: 0, kind: input, shape index: {}]   ;;  %s865_s1 = inlined_call_operand.hbm [shape: f32[16,256], index: 1, kind: input, shape index: {}]   ;;  %s866_s2 = inlined_call_operand.hbm [shape: f32[16,256], index: 2, kind: output, shape index: {}]  }
   0x1   :  { %874 = sst [smem:[#allocation17_spill]] %s864_s0 }
   0x2   :  { %875 = sst [smem:[#allocation18_spill]] %s866_s2 }
   0x3   :  { %7 = vsyncpa [#allocation3], 0 }
   0x4   :  { %8 = vsyncpa [#allocation6], 0 }
   0x5   :  { %10 = vsyncpa [#allocation6 + $0x1], 0 }
   0x6   :  { %11 = vsyncpa [#allocation4], 0 }
   0x7   :  { %13 = vsyncpa [#allocation4 + $0x1], 0  ;;  %s651_s9 = smov 0   ;;  %s653_s10 = smov 0  }
   0x8   :  { %s655_s11 = smov 0   ;;  %s657_s12 = smov 0  }
   0x9   :  { %s659_s13 = smov 0   ;;  %s661_s14 = smov 0  }
   0xa   :  { %s663_s15 = smov 0   ;;  %s665_s16 = smov 0  }
   0xb   :  { %s667_s17 = smov 0   ;;  %s669_s18 = smov 0  }
   0xc   :  { %s671_s19 = smov 0  }
   0xd LB: > { %876 = sst [smem:[#allocation11_spill]] %s593_s9  ;;  %s322_s20 = sadd.s32 4294967295, %s633_s19   ;;  %s633_s19 = sphi %s671_s19, %s19_s19   ;;  %s629_s18 = sphi %s669_s18, %s906_s18   ;;  %s625_s17 = sphi %s667_s17, %s905_s17   ;;  %s621_s16 = sphi %s665_s16, %s904_s16   ;;  %s617_s15 = sphi %s663_s15, %s903_s15   ;;  %s613_s14 = sphi %s661_s14, %s902_s14   ;;  %s609_s13 = sphi %s659_s13, %s901_s13   ;;  %s605_s12 = sphi %s657_s12, %s896_s12   ;;  %s601_s11 = sphi %s655_s11, %s900_s11   ;;  %s597_s10 = sphi %s653_s10, %s899_s10   ;;  %s593_s9 = sphi %s651_s9, %s898_s9  }
   0xe   : > { %877 = sst [smem:[#allocation12_spill]] %s609_s13  ;;  %s323_s21 = sadd.s32 4294967294, %s633_s19  }
   0xf   : > { %878 = sst [smem:[#allocation13_spill]] %s617_s15  ;;  %p51_p0 = scmp.ne.s32.totalorder %s609_s13, %s605_s12 }
  0x10   : > { %p52_p1 = scmp.eq.s32.totalorder %s322_s20, 0  ;;  %p79_p2 = scmp.ne.s32.totalorder %s597_s10, %s593_s9 }
  0x11   : > { %p709_p3 = scmp.eq.s32.totalorder %s322_s20, 3  ;;  %p111_p5 = scmp.eq.s32.totalorder %s323_s21, 3 }
  0x12   : > { %p713_p4 = por %p52_p1, %p51_p0  ;;  %p717_p6 = por %p79_p2, %p52_p1 }
  0x13   : > { %p324_p7 = scmp.ge.s32.totalorder %s633_s19, 1  ;;  %p722_p8 = por %p111_p5, %p79_p2 }
  0x14   : > { %p118_p9 = scmp.lt.s32.totalorder %s633_s19, 5  ;;  %s325_s26 = sshll.u32 %s621_s16, 3 }
  0x15   : > { %s882_s25 = scalar_select %p722_p8, 1, 0 }
  0x16   : > { %p728_p10 = pnand %p324_p7, %p118_p9  ;;  %s885_s0 = sld [smem:[#allocation17_spill]] }
  0x17   : > { %883 = sst [smem:[#allocation14_spill]] %s882_s25  ;;  %s635_s4 = smov [#allocation2]  }
  0x18   : > { %s134_s5 = sshll.u32 %s635_s4, 4  ;;  %p344_p11 = pneg %p728_p10  ;;  %s135_s5 = int_to_ptr.vmem [resolvable:$true] %s134_s5 }
  0x1a   : > { %p739_p12 = pnand %p344_p11, %p713_p4 }
  0x1c   : > { %s130_s30 = scalar_lea.hbm %s885_s0, %s325_s26  ;;  %p451_p0 = pneg %p739_p12 }
  0x1d   : > { %s132_s3 = sshll.u32 %s130_s30, 4  ;;  %s454_s21 = scalar_lea.hbm %s885_s0, 16  ;;  %s133_s3 = int_to_ptr.hbm [resolvable:$true] %s132_s3 }
  0x1e   : > { %s447_s7 = sshra.s32 %s133_s3, 4  ;;  %s448_s7 = int_to_ptr.hbm [resolvable:$true] %s447_s7 }
  0x1f   : > { %s449_s8 = scalar_lea.hbm %s448_s7, 8  ;;  %p455_p5 = scmp.lt.s32.totalorder %s448_s7, %s885_s0 }
  0x20   : > { %p450_p13 = scmp.ne.s32.totalorder %s448_s7, %s449_s8  ;;  %p456_p7 = scmp.lt.s32.totalorder %s454_s21, %s449_s8 }
  0x22   : > { %p452_p1 = pnand %p451_p0, %p450_p13  ;;  %p457_p9 = por %p456_p7, %p455_p5 }
  0x24   : > { %p453_p2 = pneg %p452_p1 }
  0x26   : > { %p458_p11 = pnand %p457_p9, %p453_p2 }
  0x28   : > { %461 = shalt.err (!%p458_p11)
}
  0x29   : > { %347 = dma.hbm_to_vmem [thread:$0]  (!%p739_p12), %s133_s3, 128, %s135_s5, [#allocation3]  }
  0x2a   : > { %s28_s29 = sadd.s32 1, %s625_s17  ;;  %s31_s30 = sadd.s32 1, %s629_s18 }
  0x2b   : > { %p29_p13 = scmp.ge.s32.totalorder %s28_s29, 2  ;;  %s38_s4 = sadd.s32 1, %s613_s14 }
  0x2c   : > { %s66_s6 = sadd.s32 1, %s601_s11  ;;  %p73_p0 = scmp.ne.s32.totalorder %s601_s11, %s597_s10 }
  0x2d   : > { %s908_s29 = smov (%p29_p13, %s28_s29), 0  ;;  %s910_s30 = smov (!%p29_p13, %s31_s30), %s629_s18 }
  0x2e   : > { %887 = sst [smem:[#allocation15_spill]] %s908_s29  ;;  %s62_s7 = ssub.s32 %s625_s17, %s908_s29 }
  0x2f   : > { %p74_p1 = scmp.eq.s32.totalorder %s633_s19, 0  ;;  %p33_p2 = scmp.ge.s32.totalorder %s910_s30, 2 }
  0x30   : > { %p767_p12 = por %p709_p3, %p73_p0  ;;  %p356_p7 = scmp.lt.s32.totalorder %s633_s19, 4 }
  0x31   : > { %p771_p5 = por %p74_p1, %p73_p0  ;;  %s912_s30 = smov (%p33_p2, %s910_s30), 0 }
  0x32   : > { %s888_s3 = scalar_select %p767_p12, 1, 0 }
  0x33   : > { %s145_s8 = sand.u32 1, %s601_s11   ;;  %s328_s12 = sshll.u32 %s629_s18, 1 }
  0x34   : > { %889 = sst [smem:[#allocation16_spill]] %s888_s3  ;;  %s35_s20 = ssub.s32 %s629_s18, %s912_s30 }
  0x35   : > { %p36_p9 = scmp.eq.s32.totalorder %s35_s20, 0  ;;  %s63_s21 = sor.u32 %s62_s7, %s35_s20 }
  0x36   : > { %p64_p11 = scmp.eq.s32.totalorder %s63_s21, 0  ;;  %s327_s22 = sshll.u32 %s145_s8, 3 }
  0x37   : > { %s783_s26 = scalar_select %p36_p9, %s613_s14, %s38_s4  }
  0x38   : > { %s786_s28 = scalar_select %p64_p11, %s601_s11, %s66_s6  }
  0x39   : > { %s153_s0 = sadd.s32 %s625_s17, %s328_s12  ;;  %s149_s13 = scalar_lea.vmem [#allocation5], %s327_s22 }
  0x3a   : > { %s329_s29 = sshll.u32 %s153_s0, 3  ;;  %s159_s25 = sshll.u32 %s149_s13, 4  ;;  %s160_s25 = int_to_ptr.vmem [resolvable:$true] %s159_s25 }
  0x3b   : > { %s155_s2 = scalar_lea.hbm %s865_s1, %s329_s29  ;;  %p349_p3 = pnand %p356_p7, %p771_p5 }
  0x3c   : > { %s157_s15 = sshll.u32 %s155_s2, 4  ;;  %s146_s7 = scalar_lea.sflag [#allocation6], %s145_s8  ;;  %s158_s15 = int_to_ptr.hbm [resolvable:$true] %s157_s15 }
  0x3d   : > { %351 = dma.hbm_to_vmem [thread:$0]  (!%p349_p3), %s158_s15, 128, %s160_s25, %s146_s7  }
  0x3e   : > { %168 = sbr.rel (%p728_p10) target bundleno = 94 (0x5e), region = 28 }
  0x43   : > { %580 = dma.done.wait (%p713_p4), [#allocation3], 128  }
  0x44   : > { %582 = vsyncadd (%p713_p4), [#allocation3], 4294967168  ;;  %s803_s0 = sand.u32 1, %s597_s10  }
  0x45   : > { %s331_s2 = sshll.u32 %s803_s0, 3  ;;  %s176_s9 = scalar_lea.sflag [#allocation6], %s803_s0 }
  0x46   : > { %s179_s13 = scalar_lea.vmem [#allocation5], %s331_s2 }
  0x47   : > { %584 = dma.done.wait (%p717_p6), %s176_s9, 128  }
  0x48   : > { %586 = vsyncadd (%p717_p6), %s176_s9, 4294967168  ;;  %s891_s15 = sld [smem:[#allocation13_spill]]  ;;  %s334_s25 = sshll.u32 %s621_s16, 1  ;;  %v201_v0 = vld [vmem:[%s179_s13] sm:$0xff]  ;;  %v202_v1 = vld [vmem:[#allocation2] sm:$0xff] }
  0x49   : > { %s892_s6 = sld [smem:[#allocation18_spill]]  ;;  %s200_s8 = scalar_lea.vmem [#allocation7], %s331_s2  ;;  %v203_v2 = vadd.f32 %v202_v1, %v201_v0 }
  0x4a   : > { %s220_s12 = sshll.u32 %s200_s8, 4  ;;  %s206_s24 = scalar_lea.sflag [#allocation4], %s803_s0  ;;  %s221_s12 = int_to_ptr.vmem [resolvable:$true] %s220_s12 }
  0x4b   : > { %204 = vst [vmem:[%s200_s8] sm:$0xff] %v203_v2 }
  0x4e   : > { %s216_s23 = sadd.s32 %s891_s15, %s334_s25 }
  0x4f   : > { %s335_s27 = sshll.u32 %s216_s23, 3  ;;  %s527_s2 = scalar_lea.hbm %s892_s6, 32 }
  0x50   : > { %s218_s5 = scalar_lea.hbm %s892_s6, %s335_s27 }
  0x51   : > { %s222_s20 = sshll.u32 %s218_s5, 4  ;;  %s223_s20 = int_to_ptr.hbm [resolvable:$true] %s222_s20 }
  0x52   : > { %s521_s21 = sshra.s32 %s223_s20, 4  ;;  %s522_s21 = int_to_ptr.hbm [resolvable:$true] %s521_s21 }
  0x53   : > { %s523_s16 = scalar_lea.hbm %s522_s21, 8  ;;  %p528_p13 = scmp.lt.s32.totalorder %s522_s21, %s892_s6 }
  0x54   : > { %p524_p4 = scmp.ne.s32.totalorder %s522_s21, %s523_s16  ;;  %p529_p0 = scmp.lt.s32.totalorder %s527_s2, %s523_s16 }
  0x56   : > { %p525_p6 = pnand %p524_p4, %p767_p12  ;;  %p530_p1 = por %p529_p0, %p528_p13 }
  0x58   : > { %p526_p10 = pneg %p525_p6 }
  0x5a   : > { %p531_p2 = pnand %p530_p1, %p526_p10 }
  0x5c   : > { %534 = shalt.err (!%p531_p2)
}
  0x5d   : > { %342 = dma.vmem_to_hbm [thread:$0]  (%p767_p12), %s221_s12, 128, %s223_s20, %s206_s24  }
  0x5e PF: > { %s894_s0 = sld [smem:[#allocation11_spill]]  ;;  %p357_p5 = scmp.ge.s32.totalorder %s633_s19, 2 }
  0x60   : > { %p353_p7 = pnand %p357_p5, %p722_p8 }
  0x62   : > { %p354_p9 = pneg %p353_p7 }
  0x64   : > { %s234_s25 = sand.u32 1, %s894_s0  }
  0x65   : > { %s235_s23 = scalar_lea.sflag [#allocation4], %s234_s25 }
  0x66   : > { %588 = dma.done.wait (%p354_p9), %s235_s23, 128  }
  0x67   : > { %590 = vsyncadd (%p354_p9), %s235_s23, 4294967168  ;;  %s19_s19 = sadd.s32 1, %s633_s19   ;;  %s896_s12 = sld [smem:[#allocation12_spill]] }
  0x68   : > { %p16_p11 = scmp.ge.s32.totalorder %s19_s19, 6   ;;  %s897_s27 = sld [smem:[#allocation15_spill]] }
  0x69   : > { %s898_s9 = smov %s597_s10  ;;  %s899_s10 = smov %s601_s11 }
  0x6a   : > { %s900_s11 = smov %s786_s28  ;;  %s901_s13 = smov %s613_s14 }
  0x6b   : > { %s902_s14 = smov %s783_s26  ;;  %s903_s15 = smov %s625_s17 }
  0x6c   : > { %s904_s16 = smov %s629_s18  ;;  %s906_s18 = smov %s912_s30 }
  0x6d   :  { %18 = sbr.rel (!%p16_p11) target bundleno = 13 (0xd), region = 79 }
  0x6e   : > { %s905_s17 = smov %s897_s27 }
  0x72   :  { %241 = vsyncpa [#allocation3], 1 }
  0x73   :  { %243 = vsyncpa [#allocation3 + $0x1], 1 }
  0x74   :  { %244 = vsyncpa [#allocation6], 1 }
  0x75   :  { %246 = vsyncpa [#allocation6 + $0x1], 1 }
  0x76   :  { %247 = vsyncpa [#allocation4], 1 }
  0x77   :  { %249 = vsyncpa [#allocation4 + $0x1], 1 }

// kernel: tpu_custom_call.1
= control target key start
LH: loop header
LB: loop body
LE: loop exit
PB: predicated region body
PF: predicated region fallthrough
CT: control target
= control target key end

     0   :  { %s3309_s0 = inlined_call_operand.hbm [shape: f32[2,8,8,384], index: 0, kind: input, shape index: {}]   ;;  %s3310_s1 = inlined_call_operand.hbm [shape: f32[2,128,384], index: 1, kind: input, shape index: {}]   ;;  %s3311_s2 = inlined_call_operand.hbm [shape: f32[2,1,128], index: 2, kind: input, shape index: {}]   ;;  %s3312_s3 = inlined_call_operand.hbm [shape: f32[8,128], index: 3, kind: input, shape index: {}]   ;;  %s3313_s4 = inlined_call_operand.hbm [shape: s32[8,128], index: 4, kind: input, shape index: {}]   ;;  %s3314_s5 = inlined_call_operand.hbm [shape: f32[16,8,128], index: 5, kind: output, shape index: {0}]   ;;  %s3315_s6 = inlined_call_operand.hbm [shape: f32[2,8,128], index: 6, kind: output, shape index: {1}]  }
   0x1   :  { %3345 = sst [smem:[#allocation41_spill]] %s3309_s0 }
   0x2   :  { %3346 = sst [smem:[#allocation42_spill]] %s3310_s1 }
   0x3   :  { %3347 = sst [smem:[#allocation43_spill]] %s3312_s3 }
   0x4   :  { %3348 = sst [smem:[#allocation44_spill]] %s3313_s4 }
   0x5   :  { %3349 = sst [smem:[#allocation45_spill]] %s3314_s5 }
   0x6   :  { %3350 = sst [smem:[#allocation46_spill]] %s3315_s6 }
   0x7   :  { %12 = vsyncpa [#allocation4], 0 }
   0x8   :  { %14 = vsyncpa [#allocation4 + $0x1], 0 }
   0x9   :  { %15 = vsyncpa [#allocation7], 0 }
   0xa   :  { %17 = vsyncpa [#allocation7 + $0x1], 0 }
   0xb   :  { %18 = vsyncpa [#allocation10], 0 }
   0xc   :  { %19 = vsyncpa [#allocation5], 0 }
   0xd   :  { %21 = vsyncpa [#allocation5 + $0x1], 0 }
   0xe   :  { %22 = vsyncpa [#allocation14], 0 }
   0xf   :  { %24 = vsyncpa [#allocation14 + $0x1], 0  ;;  %s2362_s21 = smov 0   ;;  %s2364_s22 = smov 0  }
  0x10   :  { %s2366_s23 = smov 0   ;;  %s2368_s24 = smov 0  }
  0x11   :  { %s2370_s25 = smov 0   ;;  %s2372_s26 = smov 0  }
  0x12   :  { %s2374_s27 = smov 0   ;;  %s2376_s28 = smov 0  }
  0x13   :  { %s2378_s29 = smov 0  }
  0x14 LB: > { %3351 = sst [smem:[#allocation20_spill]] %s2286_s21  ;;  %s2408_s30 = sadd.s32 4294967295, %s2318_s29   ;;  %s2318_s29 = sphi %s2378_s29, %s30_s29   ;;  %s2314_s28 = sphi %s2376_s28, %s3481_s28   ;;  %s2310_s27 = sphi %s2374_s27, %s3480_s27   ;;  %s2306_s26 = sphi %s2372_s26, %s3479_s26   ;;  %s2302_s25 = sphi %s2370_s25, %s3478_s25   ;;  %s2298_s24 = sphi %s2368_s24, %s3477_s24   ;;  %s2294_s23 = sphi %s2366_s23, %s3476_s23   ;;  %s2290_s22 = sphi %s2364_s22, %s3475_s22   ;;  %s2286_s21 = sphi %s2362_s21, %s3472_s21  }
  0x15   : > { %3352 = sst [smem:[#allocation21_spill]] %s2290_s22  ;;  %s1727_s7 = sadd.s32 4294967294, %s2318_s29  }
  0x16   : > { %3353 = sst [smem:[#allocation22_spill]] %s2298_s24  ;;  %p67_p0 = scmp.ne.s32.totalorder %s2306_s26, %s2302_s25 }
  0x17   : > { %3354 = sst [smem:[#allocation23_spill]] %s2310_s27  ;;  %p68_p1 = scmp.eq.s32.totalorder %s2318_s29, 0 }
  0x18   : > { %3355 = sst [smem:[#allocation24_spill]] %s2408_s30  ;;  %p73_p2 = scmp.ne.s32.totalorder %s2302_s25, %s2298_s24 }
  0x19   : > { %p74_p3 = scmp.eq.s32.totalorder %s2408_s30, 0  ;;  %p2419_p4 = por %p68_p1, %p67_p0 }
  0x1a   : > { %p216_p5 = scmp.ne.s32.totalorder %s2294_s23, %s2290_s22  ;;  %p217_p7 = scmp.eq.s32.totalorder %s2408_s30, 1 }
  0x1b   : > { %p2427_p6 = por %p74_p3, %p73_p2  ;;  %p222_p8 = scmp.ne.s32.totalorder %s2290_s22, %s2286_s21 }
  0x1c   : > { %p223_p9 = scmp.eq.s32.totalorder %s1727_s7, 1  ;;  %p2434_p10 = por %p217_p7, %p216_p5 }
  0x1d   : > { %s3357_s11 = scalar_select %p2427_p6, 1, 0 }
  0x1e   : > { %s3359_s12 = scalar_select %p2434_p10, 1, 0 }
  0x1f   : > { %3358 = sst [smem:[#allocation25_spill]] %s3357_s11  ;;  %p2438_p11 = por %p217_p7, %p67_p0 }
  0x20   : > { %3360 = sst [smem:[#allocation26_spill]] %s3359_s12  ;;  %p2442_p12 = por %p223_p9, %p222_p8 }
  0x21   : > { %s3361_s13 = scalar_select %p2438_p11, 1, 0 }
  0x22   : > { %s3363_s14 = scalar_select %p2442_p12, 1, 0 }
  0x23   : > { %3362 = sst [smem:[#allocation27_spill]] %s3361_s13  ;;  %p2446_p13 = por %p223_p9, %p73_p2 }
  0x24   : > { %3364 = sst [smem:[#allocation28_spill]] %s3363_s14  ;;  %p1728_p1 = scmp.ge.s32.totalorder %s2318_s29, 1 }
  0x25   : > { %s3365_s15 = scalar_select %p2446_p13, 1, 0 }
  0x26   : > { %p258_p5 = scmp.lt.s32.totalorder %s2318_s29, 3  ;;  %s3367_s3 = sld [smem:[#allocation43_spill]] }
  0x27   : > { %3366 = sst [smem:[#allocation29_spill]] %s3365_s15  ;;  %s2320_s20 = smov [#allocation9]  }
  0x28   : > { %p2455_p0 = pnand %p1728_p1, %p258_p5  ;;  %s274_s7 = sshll.u32 %s2320_s20, 4  ;;  %s275_s7 = int_to_ptr.vmem [resolvable:$true] %s274_s7 }
  0x29   : > { %p1857_p8 = scmp.lt.s32.totalorder %s2318_s29, 2  ;;  %s49_s9 = sadd.s32 1, %s2314_s28 }
  0x2a   : > { %p1831_p2 = pneg %p2455_p0  ;;  %p51_p5 = scmp.ge.s32.totalorder %s49_s9, 2 }
  0x2b   : > { %p2471_p1 = pnand %p1857_p8, %p2419_p4  ;;  %p187_p7 = scmp.ge.s32.totalorder %s2314_s28, 1 }
  0x2c   : > { %s272_s18 = sshll.u32 %s3367_s3, 4  ;;  %p2465_p9 = pnand %p1831_p2, %p74_p3  ;;  %s273_s18 = int_to_ptr.hbm [resolvable:$true] %s272_s18 }
  0x2d   : > { %s2480_s20 = sand.u32 1, %s2306_s26   ;;  %s326_s5 = sand.u32 1, %s2318_s29  }
  0x2e   : > { %1834 = dma.hbm_to_vmem [thread:$0]  (!%p2465_p9), %s273_s18, 128, %s275_s7, [#allocation10]  }
  0x2f   : > { %s2482_s8 = scalar_select %p51_p5, 0, %s49_s9  }
  0x30   : > { %s188_s10 = scalar_select %p187_p7, 1, 0 }
  0x31   : > { %3371 = sst [smem:[#allocation30_spill]] %s2482_s8  ;;  %s53_s3 = ssub.s32 %s2314_s28, %s2482_s8 }
  0x32   : > { %p194_p4 = scmp.ge.s32.totalorder %s2482_s8, 1  ;;  %p58_p2 = scmp.eq.s32.totalorder %s53_s3, 0 }
  0x33   : > { %s190_s15 = ssub.s32 1, %s188_s10  ;;  %s198_s18 = sadd.s32 1, %s2482_s8 }
  0x34   : > { %s192_s24 = smul.u32 %s190_s15, %s49_s9  ;;  %s3372_s7 = sadd.s32 1, %s2306_s26 }
  0x35   : > { %s2491_s14 = scalar_select %p58_p2, %s2306_s26, %s3372_s7  }
  0x36   : > { %s195_s21 = scalar_select %p194_p4, 1, 0 }
  0x37   : > { %3373 = sst [smem:[#allocation31_spill]] %s2491_s14  ;;  %s1809_s12 = smul.u32 384, %s2480_s20 }
  0x38   : > { %s197_s13 = ssub.s32 1, %s195_s21  ;;  %s3374_s4 = sld [smem:[#allocation44_spill]] }
  0x39   : > { %s199_s6 = smul.u32 %s198_s18, %s197_s13  ;;  %s3375_s1 = sld [smem:[#allocation42_spill]] }
  0x3a   : > { %s1810_s3 = smul.u32 384, %s2314_s28  ;;  %s330_s7 = scalar_lea.vmem [#allocation6], %s1809_s12 }
  0x3b   : > { %s201_s11 = ssub.s32 %s192_s24, %s199_s6  ;;  %s338_s21 = sshll.u32 %s330_s7, 4  ;;  %s339_s21 = int_to_ptr.vmem [resolvable:$true] %s338_s21 }
  0x3c   : > { %p204_p7 = scmp.eq.s32.totalorder %s201_s11, 0  ;;  %s3376_s8 = sadd.s32 1, %s2294_s23 }
  0x3d   : > { %s327_s22 = scalar_lea.sflag [#allocation7], %s326_s5  ;;  %s2321_s6 = smov 384  }
  0x3e   : > { %s286_s30 = sshll.u32 %s3374_s4, 4  ;;  %s2322_s24 = smov 24   ;;  %s287_s30 = int_to_ptr.hbm [resolvable:$true] %s286_s30 }
  0x3f   : > { %s335_s15 = scalar_lea.hbm %s3375_s1, %s1810_s3  ;;  %s2323_s27 = smov [#allocation11]  }
  0x40   : > { %s2505_s13 = scalar_select %p204_p7, %s2294_s23, %s3376_s8  }
  0x41   : > { %s336_s18 = sshll.u32 %s335_s15, 4  ;;  %s288_s11 = sshll.u32 %s2323_s27, 4  ;;  %s337_s18 = int_to_ptr.hbm [resolvable:$true] %s336_s18  ;;  %s289_s11 = int_to_ptr.vmem [resolvable:$true] %s288_s11 }
  0x42   : > { %1844 = dma.hbm_to_vmem [thread:$0]  (!%p2471_p1), %s337_s18, 6144, %s339_s21, %s327_s22, %s2321_s6, %s2321_s6, %s2322_s24  }
  0x43   : > { %s1807_s12 = smul.u32 192, %s2480_s20  ;;  %s3377_s0 = sld [smem:[#allocation41_spill]] }
  0x44   : > { %s1808_s3 = smul.u32 192, %s2314_s28  ;;  %s300_s1 = scalar_lea.sflag [#allocation4], %s2480_s20 }
  0x45   : > { %1837 = dma.hbm_to_vmem [thread:$0]  (!%p2465_p9), %s287_s30, 128, %s289_s11, [#allocation10]  }
  0x46   : > { %s303_s15 = scalar_lea.vmem [#allocation3], %s1807_s12  ;;  %s354_s27 = scalar_lea.hbm %s3311_s2, %s2314_s28 }
  0x47   : > { %s316_s7 = sshll.u32 %s303_s15, 4  ;;  %s356_s4 = sshll.u32 %s354_s27, 4  ;;  %s317_s7 = int_to_ptr.vmem [resolvable:$true] %s316_s7  ;;  %s357_s4 = int_to_ptr.hbm [resolvable:$true] %s356_s4 }
  0x48   : > { %s351_s16 = scalar_lea.vmem [#allocation8], %s2480_s20  ;;  %367 = sbr.rel (%p2455_p0) target bundleno = 1807 (0x70f), region = 40 }
  0x49   : > { %s313_s5 = scalar_lea.hbm %s3377_s0, %s1808_s3  ;;  %s358_s14 = sshll.u32 %s351_s16, 4  ;;  %s359_s14 = int_to_ptr.vmem [resolvable:$true] %s358_s14 }
  0x4a   : > { %s314_s9 = sshll.u32 %s313_s5, 4  ;;  %s315_s9 = int_to_ptr.hbm [resolvable:$true] %s314_s9 }
  0x4b   : > { %1841 = dma.hbm_to_vmem [thread:$0]  (!%p2471_p1), %s315_s9, 3072, %s317_s7, %s300_s1, %s2321_s6, %s2321_s6, %s2322_s24  }
  0x4c   : > { %1847 = dma.hbm_to_vmem [thread:$0]  (!%p2471_p1), %s357_s4, 16, %s359_s14, %s327_s22  }
  0x4d   : > { %s2529_s11 = sand.u32 1, %s2302_s25  }
  0x4e   : > { %s1811_s1 = smul.u32 192, %s2529_s11  ;;  %s370_s6 = scalar_lea.sflag [#allocation4], %s2529_s11 }
  0x50   : > { %s2533_s24 = scalar_lea.vmem [#allocation3], %s1811_s1 }
  0x51   : > { %2265 = dma.done.wait (%p2427_p6), %s370_s6, 3072  }
  0x52   : > { %2267 = vsyncadd (%p2427_p6), %s370_s6, 4294964224  ;;  %s3379_s17 = sld [smem:[#allocation24_spill]]  ;;  %s1812_s14 = smul.u32 384, %s2529_s11 }
  0x54   : > { %s2541_s20 = scalar_lea.vmem [#allocation6], %s1812_s14 }
  0x58   : > { %s379_s4 = sand.u32 1, %s3379_s17  }
  0x59   : > { %s380_s19 = scalar_lea.sflag [#allocation7], %s379_s4 }
  0x5a   : > { %2269 = dma.done.wait (%p2427_p6), %s380_s19, 6160  }
  0x5b   : > { %2271 = vsyncadd (%p2427_p6), %s380_s19, 4294961136  ;;  %s392_s22 = scalar_lea.vmem [#allocation8], %s2529_s11 }
  0x5c   : > { %2273 = dma.done.wait (%p74_p3), [#allocation10], 256  }
  0x5d   : > { %2275 = vsyncadd (%p74_p3), [#allocation10], 4294967040  ;;  %s3380_s12 = sld [smem:[#allocation21_spill]]  ;;  %s1738_s8 = sshll.u32 %s2529_s11, 3  ;;  %v2559_v0 = vld [vmem:[%s2541_s20 + $0x168] sm:$0xff]  ;;  %v2562_v1 = vld [vmem:[%s2541_s20 + $0x170] sm:$0xff] }
  0x5e   : > { %v2565_v2 = vld [vmem:[%s2541_s20 + $0x150] sm:$0xff]  ;;  %517 = vmatpush.msra.mxu0 %v2559_v0  ;;  %537 = vmatpush.msra.mxu1 %v2562_v1  ;;  %v2570_v3 = vld [vmem:[%s2541_s20 + $0x158] sm:$0xff]  ;;  %v2576_v5 = vld [vmem:[%s2541_s20 + $0x140] sm:$0xff]  ;;  %v2324_v20 = vmov 0   ;;  %s2775_s9 = scalar_lea.vmem [#allocation13], %s1738_s8  ;;  %s3390_s15 = sld [smem:[#allocation23_spill]] }
  0x5f   : > { %v2573_v4 = vld [vmem:[%s2541_s20 + $0x138] sm:$0xff]  ;;  %v2581_v6 = vld [vmem:[%s2541_s20 + $0x120] sm:$0xff]  ;;  %v2584_v7 = vld [vmem:[%s2541_s20 + $0x128] sm:$0xff]  ;;  %1940 = vset.pattern.permute.xlu0 %v2324_v20 }
  0x60   : > { %518 = vmatpush.msra.mxu0 %v2565_v2  ;;  %538 = vmatpush.msra.mxu1 %v2570_v3  ;;  %v2589_v8 = vld [vmem:[%s2541_s20 + $0x108] sm:$0xff]  ;;  %v2592_v9 = vld [vmem:[%s2541_s20 + $0x110] sm:$0xff]  ;;  %v2600_v11 = vld [vmem:[%s2541_s20 + $0xf8] sm:$0xff] }
  0x61   : > { %v2597_v10 = vld [vmem:[%s2541_s20 + $0xf0] sm:$0xff]  ;;  %v2603_v12 = vld [vmem:[%s2541_s20 + $0x178] sm:$0xff]  ;;  %v2608_v13 = vld [vmem:[%s2541_s20 + $0x160] sm:$0xff] }
  0x62   : > { %519 = vmatpush.msra.mxu0 %v2573_v4  ;;  %539 = vmatpush.msra.mxu1 %v2576_v5  ;;  %v2611_v14 = vld [vmem:[%s2541_s20 + $0xd8] sm:$0xff]  ;;  %v2614_v15 = vld [vmem:[%s2541_s20 + $0xe0] sm:$0xff]  ;;  %v2620_v16 = vld [vmem:[%s2541_s20 + $0x148] sm:$0xff] }
  0x63   : > { %s3344_s3 = sand.u32 1, %s3380_s12   ;;  %557 = vmatpush.msra.mxu2 %v2603_v12  ;;  %v2623_v17 = vld [vmem:[%s2541_s20 + $0xc0] sm:$0xff]  ;;  %v2626_v18 = vld [vmem:[%s2541_s20 + $0xc8] sm:$0xff]  ;;  %v2634_v21 = vld [vmem:[%s2541_s20 + $0x130] sm:$0xff] }
  0x64   : > { %s2556_s10 = sshll.u32 %s3344_s3, 6  ;;  %520 = vmatpush.msra.mxu0 %v2581_v6  ;;  %540 = vmatpush.msra.mxu1 %v2584_v7  ;;  %v2629_v19 = vld [vmem:[#allocation9] sm:$0xff]  ;;  %v2640_v23 = vld [vmem:[%s2541_s20 + $0xb0] sm:$0xff]  ;;  %v2649_v25 = vld [vmem:[%s2541_s20 + $0x118] sm:$0xff]  ;;  %p1742_p3 = scmp.ne.s32.totalorder %s3390_s15, 1 }
  0x65   : > { %558 = vmatpush.msra.mxu2 %v2608_v13  ;;  %v2637_v22 = vld [vmem:[%s2541_s20 + $0xa8] sm:$0xff]  ;;  %v2646_v24 = vld [vmem:[%s2541_s20 + $0x90] sm:$0xff]  ;;  %v2652_v26 = vld [vmem:[%s2541_s20 + $0x98] sm:$0xff]  ;;  %s2771_s5 = scalar_lea.vmem [#allocation12], %s2556_s10 }
  0x66   : > { %521 = vmatpush.msra.mxu0 %v2589_v8  ;;  %541 = vmatpush.msra.mxu1 %v2592_v9  ;;  %v511_v27 = vld [vmem:[#allocation11] sm:$0xff]  ;;  %v2658_v28 = vld [vmem:[%s2541_s20 + $0x100] sm:$0xff]  ;;  %v2661_v29 = vld [vmem:[%s2541_s20 + $0x78] sm:$0xff] }
  0x67   : > { %559 = vmatpush.msra.mxu2 %v2620_v16  ;;  %v2664_v30 = vld [vmem:[%s2541_s20 + $0x80] sm:$0xff]  ;;  %513 = vperm.xlu0 %1940, %v511_v27   ;;  %v2670_v31 = vld [vmem:[%s2541_s20 + $0xe8] sm:$0xff]  ;;  %v2682_v34 = vld [vmem:[%s2541_s20 + $0xd0] sm:$0xff] }
  0x68   : > { %522 = vmatpush.msra.mxu0 %v2597_v10  ;;  %542 = vmatpush.msra.mxu1 %v2600_v11  ;;  %v2673_v32 = vld [vmem:[%s2541_s20 + $0x60] sm:$0xff]  ;;  %v2676_v33 = vld [vmem:[%s2541_s20 + $0x68] sm:$0xff]  ;;  %v2688_v36 = vld [vmem:[%s2541_s20 + $0x50] sm:$0xff] }
  0x69   : > { %560 = vmatpush.msra.mxu2 %v2634_v21  ;;  %v2685_v35 = vld [vmem:[%s2541_s20 + $0x48] sm:$0xff]  ;;  %v2694_v37 = vld [vmem:[%s2541_s20 + $0xb8] sm:$0xff]  ;;  %v2697_v38 = vld [vmem:[%s2541_s20 + $0x30] sm:$0xff] }
  0x6a   : > { %523 = vmatpush.msra.mxu0 %v2611_v14  ;;  %543 = vmatpush.msra.mxu1 %v2614_v15  ;;  %3381 = vst [vmem:[#allocation32_spill] sm:$0xff] %v2697_v38  ;;  %v2700_v39 = vld [vmem:[%s2541_s20 + $0x38] sm:$0xff]  ;;  %v2706_v40 = vld [vmem:[%s2541_s20 + $0xa0] sm:$0xff]  ;;  %v2718_v43 = vld [vmem:[%s2541_s20 + $0x88] sm:$0xff] }
  0x6b   : > { %561 = vmatpush.msra.mxu2 %v2649_v25  ;;  %3382 = vst [vmem:[#allocation33_spill] sm:$0xff] %v2700_v39  ;;  %v2709_v41 = vld [vmem:[%s2541_s20 + $0x18] sm:$0xff]  ;;  %v2712_v42 = vld [vmem:[%s2541_s20 + $0x20] sm:$0xff]  ;;  %v2724_v45 = vld [vmem:[%s2541_s20 + $0x8] sm:$0xff] }
  0x6c   : > { %524 = vmatpush.msra.mxu0 %v2623_v17  ;;  %544 = vmatpush.msra.mxu1 %v2626_v18  ;;  %3383 = vst [vmem:[#allocation34_spill] sm:$0xff] %v2709_v41  ;;  %v2721_v44 = vld [vmem:[%s2541_s20] sm:$0xff]  ;;  %v2731_v46 = vld [vmem:[%s2541_s20 + $0x70] sm:$0xff]  ;;  %v2738_v47 = vld [vmem:[%s2541_s20 + $0x58] sm:$0xff] }
  0x6d   : > { %562 = vmatpush.msra.mxu2 %v2658_v28  ;;  %3384 = vst [vmem:[#allocation35_spill] sm:$0xff] %v2712_v42  ;;  %v2742_v48 = vld [vmem:[%s2541_s20 + $0x40] sm:$0xff]  ;;  %v2746_v49 = vld [vmem:[%s2541_s20 + $0x28] sm:$0xff]  ;;  %v2750_v50 = vld [vmem:[%s2541_s20 + $0x10] sm:$0xff] }
  0x6e   : > { %525 = vmatpush.msra.mxu0 %v2637_v22  ;;  %545 = vmatpush.msra.mxu1 %v2640_v23  ;;  %3385 = vst [vmem:[#allocation36_spill] sm:$0xff] %v2721_v44  ;;  %v577_v51 = vld [vmem:[%s2533_s24] sm:$0xff]  ;;  %v578_v52 = vld [vmem:[%s2533_s24 + $0x8] sm:$0xff] }
  0x6f   : > { %563 = vmatpush.msra.mxu2 %v2670_v31  ;;  %3386 = vst [vmem:[#allocation37_spill] sm:$0xff] %v2724_v45 }
  0x70   : > { %526 = vmatpush.msra.mxu0 %v2646_v24  ;;  %546 = vmatpush.msra.mxu1 %v2652_v26  ;;  %3387 = vst [vmem:[#allocation38_spill] sm:$0xff] %v2742_v48 }
  0x71   : > { %564 = vmatpush.msra.mxu2 %v2682_v34  ;;  %3388 = vst [vmem:[#allocation39_spill] sm:$0xff] %v2746_v49 }
  0x72   : > { %527 = vmatpush.msra.mxu0 %v2661_v29  ;;  %547 = vmatpush.msra.mxu1 %v2664_v30  ;;  %3389 = vst [vmem:[#allocation40_spill] sm:$0xff] %v2750_v50 }
  0x73   : > { %565 = vmatpush.msra.mxu2 %v2694_v37 }
  0x74   : > { %528 = vmatpush.msra.mxu0 %v2673_v32  ;;  %548 = vmatpush.msra.mxu1 %v2676_v33 }
  0x75   : > { %566 = vmatpush.msra.mxu2 %v2706_v40 }
  0x76   : > { %529 = vmatpush.msra.mxu0 %v2685_v35  ;;  %549 = vmatpush.msra.mxu1 %v2688_v36 }
  0x77   : > { %567 = vmatpush.msra.mxu2 %v2718_v43 }
  0x78   : > { %530 = vmatpush.msra.mxu0 %v2697_v38  ;;  %550 = vmatpush.msra.mxu1 %v2700_v39 }
  0x79   : > { %568 = vmatpush.msra.mxu2 %v2731_v46 }
  0x7a   : > { %531 = vmatpush.msra.mxu0 %v2709_v41  ;;  %551 = vmatpush.msra.mxu1 %v2712_v42 }
  0x7b   : > { %569 = vmatpush.msra.mxu2 %v2738_v47 }
  0x7c   : > { %532 = vmatpush.msra.mxu0 %v2721_v44  ;;  %552 = vmatpush.msra.mxu1 %v2724_v45  ;;  %v2759_v45 = vld [vmem:[%s392_s22] ss:$0 sm:$0xff] }
  0x7d   : > { %533 = vmatmul.f32.vlgmr.msra.gmra.mxu0 %v2629_v19  ;;  %553 = vmatmul.f32.vlgmr.msra.gmra.mxu1 %v2629_v19 }
  0x7e   : > { %570 = vmatpush.msra.mxu2 %v2742_v48 }
  0x80   : > { %571 = vmatpush.msra.mxu2 %v2746_v49 }
  0x82   : > { %572 = vmatpush.msra.mxu2 %v2750_v50 }
  0x83   : > { %573 = vmatmul.f32.vlgmr.msra.gmra.mxu2 %v2629_v19 }
  0xfa   : > { %v534_v53 = vpop.f32.mrf.mxu0  ;;  %v554_v54 = vpop.f32.mrf.mxu1 }
  0xfb   : > { %v580_v55 = vadd.f32 %v577_v51, %v534_v53  ;;  %v600_v56 = vadd.f32 %v578_v52, %v554_v54 }
  0xfd   : > { %v1739_v57 = vmul.f32 -1.442695, %v580_v55  ;;  %v1740_v58 = vmul.f32 -1.442695, %v600_v56 }
  0xff   : > { %1942 = vpow2.f32 %v1739_v57 }
 0x100   : > { %1944 = vpow2.f32 %v1740_v58 }
 0x105   : > { %v1943_v59 = vpop.eup %1942 }
 0x106   : > { %v1945_v60 = vpop.eup %1944  ;;  %v584_v61 = vadd.f32 1.0, %v1943_v59  ;;  %v574_v52 = vpop.f32.mrf.mxu2 }
 0x107   : > { %v604_v62 = vadd.f32 1.0, %v1945_v60  ;;  %v623_v57 = vadd.f32 %v2759_v45, %v574_v52 }
 0x108   : > { %1946 = vrcp.f32 %v584_v61  ;;  %v596_v53 = vand.u32 2147483648, %v584_v61  ;;  %v594_v55 = vand.u32 2147483647, %v584_v61  ;;  %vm590_vm1 = vweird.f32 %v584_v61 }
 0x109   : > { %1948 = vrcp.f32 %v604_v62  ;;  %vm610_vm4 = vweird.f32 %v604_v62 }
 0x10a   : > { %v597_v59 = vor.u32 1.1754944e-38, %v596_v53  ;;  %vm595_vm3 = vcmp.eq.f32.partialorder %v594_v55, 8.507059e+37 }
 0x10e   : > { %v1947_v63 = vpop.eup %1946 }
 0x10f   : > { %v1949_v20 = vpop.eup %1948  ;;  %v586_v27 = vmul.f32 %v1947_v63, %v584_v61  ;;  %vm591_vm0 = vweird.f32 %v1947_v63  ;;  %v614_v61 = vand.u32 2147483647, %v604_v62 }
 0x110   : > { %v606_v51 = vmul.f32 %v1949_v20, %v604_v62  ;;  %vm592_vm2 = vmor %vm590_vm1, %vm591_vm0  ;;  %vm611_vm5 = vweird.f32 %v1949_v20 }
 0x111   : > { %v587_v50 = vsub.f32 1.0, %v586_v27  ;;  %v579_v27 = vld [vmem:[%s2533_s24 + $0x10] sm:$0xff]  ;;  %vm612_vm6 = vmor %vm610_vm4, %vm611_vm5  ;;  %vm615_vm7 = vcmp.eq.f32.partialorder %v614_v61, 8.507059e+37 }
 0x112   : > { %v607_v58 = vsub.f32 1.0, %v606_v51 }
 0x113   : > { %v588_v54 = vmul.f32 %v1947_v63, %v587_v50  ;;  %v616_v50 = vand.u32 2147483648, %v604_v62 }
 0x114   : > { %v608_v42 = vmul.f32 %v1949_v20, %v607_v58 }
 0x115   : > { %v589_v56 = vadd.f32 %v1947_v63, %v588_v54  ;;  %v617_v52 = vor.u32 1.1754944e-38, %v616_v50 }
 0x116   : > { %v609_v54 = vadd.f32 %v1949_v20, %v608_v42 }
 0x117   : > { %v593_v60 = vsel %vm592_vm2, %v1947_v63, %v589_v56  ;;  %v2763_v63 = vpop.permute.xlu0 %513 }
 0x118   : > { %v598_v44 = vsel %vm595_vm3, %v597_v59, %v593_v60  ;;  %v613_v51 = vsel %vm612_vm6, %v1949_v20, %v609_v54  ;;  %vm1741_vm8 = vcmp.gt.s32.totalorder %v2763_v63, 0 }
 0x119   : > { %v624_v49 = vmul.f32 %v623_v57, %v598_v44  ;;  %v618_v44 = vsel %vm615_vm7, %v617_v52, %v613_v51 }
 0x11b   : > { %v625_v41 = vadd.f32 %v624_v49, %v579_v27 }
 0x11d   : > { %1950 = vtanh.f32 %v625_v41 }
 0x123   : > { %v1951_v53 = vpop.eup %1950 }
 0x124   : > { %v627_v55 = vsub.f32 %v2629_v19, %v1951_v53 }
 0x126   : > { %v628_v56 = vmul.f32 %v627_v55, %v618_v44  ;;  %635 = sbr.rel (%p1742_p3) target bundleno = 300 (0x12c), region = 68 }
 0x128   : > { %v629_v49 = vadd.f32 %v1951_v53, %v628_v56 }
 0x12a   : > { %v2768_v41 = vsel %vm1741_vm8, %v629_v49, %v2629_v19 }
 0x12b   : > { %636 = vst [vmem:[%s2771_s5] sm:$0xff] %v2768_v41 }
 0x12c PF: > { %639 = vmatpush.msra.mxu3 %v2559_v0  ;;  %659 = vmatpush.msrb.mxu0 %v2562_v1  ;;  %v3391_v19 = vld [vmem:[#allocation34_spill] sm:$0xff]  ;;  %v3392_v42 = vld [vmem:[#allocation35_spill] sm:$0xff]  ;;  %v3394_v20 = vld [vmem:[#allocation36_spill] sm:$0xff]  ;;  %vm1748_vm1 = vcmp.gt.s32.totalorder %v2763_v63, 1 }
 0x12d   : > { %679 = vmatpush.msrb.mxu1 %v2603_v12  ;;  %v3393_v62 = vld [vmem:[#allocation39_spill] sm:$0xff]  ;;  %v3395_v57 = vld [vmem:[#allocation37_spill] sm:$0xff]  ;;  %v3396_v58 = vld [vmem:[#allocation40_spill] sm:$0xff] }
 0x12e   : > { %640 = vmatpush.msra.mxu3 %v2565_v2  ;;  %660 = vmatpush.msrb.mxu0 %v2570_v3  ;;  %v1744_v59 = vld [vmem:[%s2533_s24 + $0x20] sm:$0xff]  ;;  %v1743_v50 = vld [vmem:[%s2533_s24 + $0x18] sm:$0xff] }
 0x12f   : > { %680 = vmatpush.msrb.mxu1 %v2608_v13 }
 0x130   : > { %641 = vmatpush.msra.mxu3 %v2573_v4  ;;  %661 = vmatpush.msrb.mxu0 %v2576_v5 }
 0x131   : > { %681 = vmatpush.msrb.mxu1 %v2620_v16 }
 0x132   : > { %642 = vmatpush.msra.mxu3 %v2581_v6  ;;  %662 = vmatpush.msrb.mxu0 %v2584_v7 }
 0x133   : > { %682 = vmatpush.msrb.mxu1 %v2634_v21 }
 0x134   : > { %643 = vmatpush.msra.mxu3 %v2589_v8  ;;  %663 = vmatpush.msrb.mxu0 %v2592_v9 }
 0x135   : > { %683 = vmatpush.msrb.mxu1 %v2649_v25 }
 0x136   : > { %644 = vmatpush.msra.mxu3 %v2597_v10  ;;  %664 = vmatpush.msrb.mxu0 %v2600_v11 }
 0x137   : > { %684 = vmatpush.msrb.mxu1 %v2658_v28 }
 0x138   : > { %645 = vmatpush.msra.mxu3 %v2611_v14  ;;  %665 = vmatpush.msrb.mxu0 %v2614_v15 }
 0x139   : > { %685 = vmatpush.msrb.mxu1 %v2670_v31 }
 0x13a   : > { %646 = vmatpush.msra.mxu3 %v2623_v17  ;;  %666 = vmatpush.msrb.mxu0 %v2626_v18 }
 0x13b   : > { %686 = vmatpush.msrb.mxu1 %v2682_v34 }
 0x13c   : > { %647 = vmatpush.msra.mxu3 %v2637_v22  ;;  %667 = vmatpush.msrb.mxu0 %v2640_v23 }
 0x13d   : > { %687 = vmatpush.msrb.mxu1 %v2694_v37 }
 0x13e   : > { %648 = vmatpush.msra.mxu3 %v2646_v24  ;;  %668 = vmatpush.msrb.mxu0 %v2652_v26 }
 0x13f   : > { %688 = vmatpush.msrb.mxu1 %v2706_v40 }
 0x140   : > { %649 = vmatpush.msra.mxu3 %v2661_v29  ;;  %669 = vmatpush.msrb.mxu0 %v2664_v30 }
 0x141   : > { %689 = vmatpush.msrb.mxu1 %v2718_v43 }
 0x142   : > { %650 = vmatpush.msra.mxu3 %v2673_v32  ;;  %670 = vmatpush.msrb.mxu0 %v2676_v33 }
 0x143   : > { %690 = vmatpush.msrb.mxu1 %v2731_v46 }
 0x144   : > { %651 = vmatpush.msra.mxu3 %v2685_v35  ;;  %671 = vmatpush.msrb.mxu0 %v2688_v36 }
 0x145   : > { %691 = vmatpush.msrb.mxu1 %v2738_v47 }
 0x146   : > { %652 = vmatpush.msra.mxu3 %v2697_v38  ;;  %672 = vmatpush.msrb.mxu0 %v2700_v39 }
 0x147   : > { %692 = vmatpush.msrb.mxu1 %v2742_v48 }
 0x148   : > { %653 = vmatpush.msra.mxu3 %v3391_v19  ;;  %673 = vmatpush.msrb.mxu0 %v3392_v42 }
 0x149   : > { %693 = vmatpush.msrb.mxu1 %v3393_v62 }
 0x14a   : > { %654 = vmatpush.msra.mxu3 %v3394_v20  ;;  %674 = vmatpush.msrb.mxu0 %v3395_v57 }
 0x14b   : > { %655 = vmatmul.f32.vlgmr.msra.gmra.mxu3 %v2768_v41  ;;  %675 = vmatmul.f32.vlgmr.msrb.gmra.mxu0 %v2768_v41 }
 0x14c   : > { %694 = vmatpush.msrb.mxu1 %v3396_v58 }
 0x14d   : > { %695 = vmatmul.f32.vlgmr.msrb.gmra.mxu1 %v2768_v41 }
 0x1c8   : > { %v676_v60 = vpop.f32.mrf.mxu0 }
 0x1c9   : > { %v723_v27 = vadd.f32 %v1744_v59, %v676_v60 }
 0x1ca   : > { %v696_v57 = vpop.f32.mrf.mxu1 }
 0x1cb   : > { %v1747_v54 = vmul.f32 -1.442695, %v723_v27 }
 0x1cd   : > { %1952 = vpow2.f32 %v1747_v54 }
 0x1ce   : > { %v656_v61 = vpop.f32.mrf.mxu3 }
 0x1cf   : > { %v703_v52 = vadd.f32 %v1743_v50, %v656_v61  ;;  %v743_v50 = vadd.f32 %v2759_v45, %v696_v57 }
 0x1d1   : > { %v1746_v51 = vmul.f32 -1.442695, %v703_v52 }
 0x1d3   : > { %1954 = vpow2.f32 %v1746_v51  ;;  %v1953_v53 = vpop.eup %1952  ;;  %v1745_v51 = vld [vmem:[%s2533_s24 + $0x28] sm:$0xff] }
 0x1d4   : > { %v727_v44 = vadd.f32 1.0, %v1953_v53 }
 0x1d6   : > { %vm733_vm13 = vweird.f32 %v727_v44  ;;  %v739_v39 = vand.u32 2147483648, %v727_v44  ;;  %v737_v38 = vand.u32 2147483647, %v727_v44 }
 0x1d8   : > { %vm738_vm0 = vcmp.eq.f32.partialorder %v737_v38, 8.507059e+37 }
 0x1d9   : > { %v1955_v55 = vpop.eup %1954 }
 0x1da   : > { %v707_v56 = vadd.f32 1.0, %v1955_v55 }
 0x1dc   : > { %1956 = vrcp.f32 %v707_v56  ;;  %v719_v58 = vand.u32 2147483648, %v707_v56  ;;  %v717_v60 = vand.u32 2147483647, %v707_v56  ;;  %vm713_vm10 = vweird.f32 %v707_v56 }
 0x1dd   : > { %1958 = vrcp.f32 %v727_v44 }
 0x1de   : > { %v720_v61 = vor.u32 1.1754944e-38, %v719_v58  ;;  %vm718_vm12 = vcmp.eq.f32.partialorder %v717_v60, 8.507059e+37 }
 0x1e2   : > { %v1957_v49 = vpop.eup %1956 }
 0x1e3   : > { %v1959_v19 = vpop.eup %1958  ;;  %v709_v42 = vmul.f32 %v1957_v49, %v707_v56  ;;  %vm714_vm9 = vweird.f32 %v1957_v49  ;;  %v740_v56 = vor.u32 1.1754944e-38, %v739_v39 }
 0x1e4   : > { %v729_v20 = vmul.f32 %v1959_v19, %v727_v44  ;;  %vm715_vm11 = vmor %vm713_vm10, %vm714_vm9  ;;  %vm734_vm14 = vweird.f32 %v1959_v19 }
 0x1e5   : > { %v710_v62 = vsub.f32 1.0, %v709_v42  ;;  %vm735_vm15 = vmor %vm733_vm13, %vm734_vm14 }
 0x1e6   : > { %v730_v54 = vsub.f32 1.0, %v729_v20 }
 0x1e7   : > { %v711_v59 = vmul.f32 %v1957_v49, %v710_v62 }
 0x1e8   : > { %v731_v48 = vmul.f32 %v1959_v19, %v730_v54 }
 0x1e9   : > { %v712_v27 = vadd.f32 %v1957_v49, %v711_v59 }
 0x1ea   : > { %v732_v62 = vadd.f32 %v1959_v19, %v731_v48 }
 0x1eb   : > { %v716_v52 = vsel %vm715_vm11, %v1957_v49, %v712_v27 }
 0x1ec   : > { %v721_v53 = vsel %vm718_vm12, %v720_v61, %v716_v52  ;;  %v736_v57 = vsel %vm735_vm15, %v1959_v19, %v732_v62 }
 0x1ed   : > { %v744_v55 = vmul.f32 %v743_v50, %v721_v53  ;;  %v741_v49 = vsel %vm738_vm0, %v740_v56, %v736_v57 }
 0x1ef   : > { %v745_v42 = vadd.f32 %v1745_v51, %v744_v55 }
 0x1f1   : > { %1960 = vtanh.f32 %v745_v42 }
 0x1f7   : > { %v1961_v20 = vpop.eup %1960 }
 0x1f8   : > { %v747_v58 = vsub.f32 %v2768_v41, %v1961_v20 }
 0x1fa   : > { %v748_v59 = vmul.f32 %v747_v58, %v741_v49  ;;  %756 = sbr.rel (%p1742_p3) target bundleno = 512 (0x200), region = 72 }
 0x1fc   : > { %v749_v60 = vadd.f32 %v1961_v20, %v748_v59 }
 0x1fe   : > { %v2840_v27 = vsel %vm1748_vm1, %v749_v60, %v2768_v41 }
 0x1ff   : > { %1750 = vst [vmem:[%s2771_s5 + $0x8] sm:$0xff] %v2840_v27 }
 0x200 PF: > { %761 = vmatpush.msrb.mxu2 %v2559_v0  ;;  %781 = vmatpush.msrb.mxu3 %v2562_v1  ;;  %v3398_v38 = vld [vmem:[#allocation32_spill] sm:$0xff]  ;;  %v3399_v39 = vld [vmem:[#allocation33_spill] sm:$0xff]  ;;  %v3400_v48 = vld [vmem:[#allocation38_spill] sm:$0xff]  ;;  %vm1756_vm10 = vcmp.gt.s32.totalorder %v2763_v63, 2 }
 0x201   : > { %801 = vmatpush.msra.mxu0 %v2603_v12  ;;  %v3401_v41 = vld [vmem:[#allocation34_spill] sm:$0xff]  ;;  %v3402_v44 = vld [vmem:[#allocation35_spill] sm:$0xff]  ;;  %v3404_v50 = vld [vmem:[#allocation36_spill] sm:$0xff] }
 0x202   : > { %762 = vmatpush.msrb.mxu2 %v2565_v2  ;;  %782 = vmatpush.msrb.mxu3 %v2570_v3  ;;  %v3403_v19 = vld [vmem:[#allocation39_spill] sm:$0xff]  ;;  %v3405_v54 = vld [vmem:[#allocation37_spill] sm:$0xff]  ;;  %v3406_v61 = vld [vmem:[#allocation40_spill] sm:$0xff] }
 0x203   : > { %802 = vmatpush.msra.mxu0 %v2608_v13  ;;  %v1751_v52 = vld [vmem:[%s2533_s24 + $0x30] sm:$0xff]  ;;  %v1752_v51 = vld [vmem:[%s2533_s24 + $0x38] sm:$0xff] }
 0x204   : > { %763 = vmatpush.msrb.mxu2 %v2573_v4  ;;  %783 = vmatpush.msrb.mxu3 %v2576_v5 }
 0x205   : > { %803 = vmatpush.msra.mxu0 %v2620_v16 }
 0x206   : > { %764 = vmatpush.msrb.mxu2 %v2581_v6  ;;  %784 = vmatpush.msrb.mxu3 %v2584_v7 }
 0x207   : > { %804 = vmatpush.msra.mxu0 %v2634_v21 }
 0x208   : > { %765 = vmatpush.msrb.mxu2 %v2589_v8  ;;  %785 = vmatpush.msrb.mxu3 %v2592_v9 }
 0x209   : > { %805 = vmatpush.msra.mxu0 %v2649_v25 }
 0x20a   : > { %766 = vmatpush.msrb.mxu2 %v2597_v10  ;;  %786 = vmatpush.msrb.mxu3 %v2600_v11 }
 0x20b   : > { %806 = vmatpush.msra.mxu0 %v2658_v28 }
 0x20c   : > { %767 = vmatpush.msrb.mxu2 %v2611_v14  ;;  %787 = vmatpush.msrb.mxu3 %v2614_v15 }
 0x20d   : > { %807 = vmatpush.msra.mxu0 %v2670_v31 }
 0x20e   : > { %768 = vmatpush.msrb.mxu2 %v2623_v17  ;;  %788 = vmatpush.msrb.mxu3 %v2626_v18 }
 0x20f   : > { %808 = vmatpush.msra.mxu0 %v2682_v34 }
 0x210   : > { %769 = vmatpush.msrb.mxu2 %v2637_v22  ;;  %789 = vmatpush.msrb.mxu3 %v2640_v23 }
 0x211   : > { %809 = vmatpush.msra.mxu0 %v2694_v37 }
 0x212   : > { %770 = vmatpush.msrb.mxu2 %v2646_v24  ;;  %790 = vmatpush.msrb.mxu3 %v2652_v26 }
 0x213   : > { %810 = vmatpush.msra.mxu0 %v2706_v40 }
 0x214   : > { %771 = vmatpush.msrb.mxu2 %v2661_v29  ;;  %791 = vmatpush.msrb.mxu3 %v2664_v30 }
 0x215   : > { %811 = vmatpush.msra.mxu0 %v2718_v43 }
 0x216   : > { %772 = vmatpush.msrb.mxu2 %v2673_v32  ;;  %792 = vmatpush.msrb.mxu3 %v2676_v33 }
 0x217   : > { %812 = vmatpush.msra.mxu0 %v2731_v46 }
 0x218   : > { %773 = vmatpush.msrb.mxu2 %v2685_v35  ;;  %793 = vmatpush.msrb.mxu3 %v2688_v36 }
 0x219   : > { %813 = vmatpush.msra.mxu0 %v2738_v47 }
 0x21a   : > { %774 = vmatpush.msrb.mxu2 %v3398_v38  ;;  %794 = vmatpush.msrb.mxu3 %v3399_v39 }
 0x21b   : > { %814 = vmatpush.msra.mxu0 %v3400_v48 }
 0x21c   : > { %775 = vmatpush.msrb.mxu2 %v3401_v41  ;;  %795 = vmatpush.msrb.mxu3 %v3402_v44 }
 0x21d   : > { %815 = vmatpush.msra.mxu0 %v3403_v19 }
 0x21e   : > { %776 = vmatpush.msrb.mxu2 %v3404_v50  ;;  %796 = vmatpush.msrb.mxu3 %v3405_v54 }
 0x21f   : > { %777 = vmatmul.f32.vlgmr.msrb.gmra.mxu2 %v2840_v27  ;;  %797 = vmatmul.f32.vlgmr.msrb.gmra.mxu3 %v2840_v27 }
 0x220   : > { %816 = vmatpush.msra.mxu0 %v3406_v61 }
 0x221   : > { %817 = vmatmul.f32.vlgmr.msra.gmra.mxu0 %v2840_v27 }
 0x29e   : > { %v818_v44 = vpop.f32.mrf.mxu0 }
 0x2a2   : > { %v778_v53 = vpop.f32.mrf.mxu2  ;;  %v798_v55 = vpop.f32.mrf.mxu3 }
 0x2a3   : > { %v825_v42 = vadd.f32 %v1751_v52, %v778_v53  ;;  %v845_v62 = vadd.f32 %v1752_v51, %v798_v55  ;;  %v865_v52 = vadd.f32 %v2759_v45, %v818_v44 }
 0x2a5   : > { %v1754_v56 = vmul.f32 -1.442695, %v825_v42  ;;  %v1755_v57 = vmul.f32 -1.442695, %v845_v62  ;;  %v1753_v42 = vld [vmem:[%s2533_s24 + $0x40] sm:$0xff] }
 0x2a7   : > { %1962 = vpow2.f32 %v1754_v56 }
 0x2a8   : > { %1964 = vpow2.f32 %v1755_v57 }
 0x2ad   : > { %v1963_v20 = vpop.eup %1962 }
 0x2ae   : > { %v1965_v58 = vpop.eup %1964  ;;  %v829_v49 = vadd.f32 1.0, %v1963_v20 }
 0x2af   : > { %v849_v59 = vadd.f32 1.0, %v1965_v58 }
 0x2b0   : > { %1966 = vrcp.f32 %v829_v49  ;;  %v841_v19 = vand.u32 2147483648, %v829_v49  ;;  %v839_v54 = vand.u32 2147483647, %v829_v49  ;;  %vm835_vm3 = vweird.f32 %v829_v49 }
 0x2b1   : > { %1968 = vrcp.f32 %v849_v59  ;;  %vm855_vm6 = vweird.f32 %v849_v59  ;;  %v861_v58 = vand.u32 2147483648, %v849_v59 }
 0x2b2   : > { %v842_v53 = vor.u32 1.1754944e-38, %v841_v19  ;;  %vm840_vm5 = vcmp.eq.f32.partialorder %v839_v54, 8.507059e+37 }
 0x2b6   : > { %v1967_v60 = vpop.eup %1966 }
 0x2b7   : > { %v1969_v38 = vpop.eup %1968  ;;  %v831_v39 = vmul.f32 %v1967_v60, %v829_v49  ;;  %vm836_vm2 = vweird.f32 %v1967_v60  ;;  %v862_v49 = vor.u32 1.1754944e-38, %v861_v58 }
 0x2b8   : > { %v851_v41 = vmul.f32 %v1969_v38, %v849_v59  ;;  %vm837_vm4 = vmor %vm835_vm3, %vm836_vm2  ;;  %vm856_vm7 = vweird.f32 %v1969_v38 }
 0x2b9   : > { %v832_v48 = vsub.f32 1.0, %v831_v39  ;;  %vm857_vm8 = vmor %vm855_vm6, %vm856_vm7 }
 0x2ba   : > { %v852_v51 = vsub.f32 1.0, %v851_v41 }
 0x2bb   : > { %v833_v50 = vmul.f32 %v1967_v60, %v832_v48  ;;  %v859_v48 = vand.u32 2147483647, %v849_v59 }
 0x2bc   : > { %v853_v57 = vmul.f32 %v1969_v38, %v852_v51 }
 0x2bd   : > { %v834_v61 = vadd.f32 %v1967_v60, %v833_v50  ;;  %vm860_vm9 = vcmp.eq.f32.partialorder %v859_v48, 8.507059e+37 }
 0x2be   : > { %v854_v39 = vadd.f32 %v1969_v38, %v853_v57 }
 0x2bf   : > { %v838_v55 = vsel %vm837_vm4, %v1967_v60, %v834_v61 }
 0x2c0   : > { %v843_v62 = vsel %vm840_vm5, %v842_v53, %v838_v55  ;;  %v858_v44 = vsel %vm857_vm8, %v1969_v38, %v854_v39 }
 0x2c1   : > { %v866_v56 = vmul.f32 %v865_v52, %v843_v62  ;;  %v863_v60 = vsel %vm860_vm9, %v862_v49, %v858_v44 }
 0x2c3   : > { %v867_v20 = vadd.f32 %v1753_v42, %v866_v56 }
 0x2c5   : > { %1970 = vtanh.f32 %v867_v20 }
 0x2cb   : > { %v1971_v41 = vpop.eup %1970 }
 0x2cc   : > { %v869_v19 = vsub.f32 %v2840_v27, %v1971_v41 }
 0x2ce   : > { %v870_v50 = vmul.f32 %v869_v19, %v863_v60  ;;  %878 = sbr.rel (%p1742_p3) target bundleno = 724 (0x2d4), region = 76 }
 0x2d0   : > { %v871_v54 = vadd.f32 %v1971_v41, %v870_v50 }
 0x2d2   : > { %v2904_v61 = vsel %vm1756_vm10, %v871_v54, %v2840_v27 }
 0x2d3   : > { %1758 = vst [vmem:[%s2771_s5 + $0x10] sm:$0xff] %v2904_v61 }
 0x2d4 PF: > { %883 = vmatpush.msra.mxu1 %v2559_v0  ;;  %903 = vmatpush.msra.mxu2 %v2562_v1  ;;  %v3408_v27 = vld [vmem:[#allocation32_spill] sm:$0xff]  ;;  %v3409_v59 = vld [vmem:[#allocation33_spill] sm:$0xff]  ;;  %v3410_v38 = vld [vmem:[#allocation38_spill] sm:$0xff]  ;;  %vm1764_vm3 = vcmp.gt.s32.totalorder %v2763_v63, 3 }
 0x2d5   : > { %923 = vmatpush.msra.mxu3 %v2603_v12  ;;  %v3411_v52 = vld [vmem:[#allocation34_spill] sm:$0xff]  ;;  %v3412_v51 = vld [vmem:[#allocation35_spill] sm:$0xff]  ;;  %v3414_v55 = vld [vmem:[#allocation36_spill] sm:$0xff] }
 0x2d6   : > { %884 = vmatpush.msra.mxu1 %v2565_v2  ;;  %904 = vmatpush.msra.mxu2 %v2570_v3  ;;  %v3413_v53 = vld [vmem:[#allocation39_spill] sm:$0xff]  ;;  %v3415_v42 = vld [vmem:[#allocation37_spill] sm:$0xff]  ;;  %v3416_v62 = vld [vmem:[#allocation40_spill] sm:$0xff] }
 0x2d7   : > { %924 = vmatpush.msra.mxu3 %v2608_v13  ;;  %v1759_v56 = vld [vmem:[%s2533_s24 + $0x48] sm:$0xff]  ;;  %v1760_v39 = vld [vmem:[%s2533_s24 + $0x50] sm:$0xff] }
 0x2d8   : > { %885 = vmatpush.msra.mxu1 %v2573_v4  ;;  %905 = vmatpush.msra.mxu2 %v2576_v5 }
 0x2d9   : > { %925 = vmatpush.msra.mxu3 %v2620_v16 }
 0x2da   : > { %886 = vmatpush.msra.mxu1 %v2581_v6  ;;  %906 = vmatpush.msra.mxu2 %v2584_v7 }
 0x2db   : > { %926 = vmatpush.msra.mxu3 %v2634_v21 }
 0x2dc   : > { %887 = vmatpush.msra.mxu1 %v2589_v8  ;;  %907 = vmatpush.msra.mxu2 %v2592_v9 }
 0x2dd   : > { %927 = vmatpush.msra.mxu3 %v2649_v25 }
 0x2de   : > { %888 = vmatpush.msra.mxu1 %v2597_v10  ;;  %908 = vmatpush.msra.mxu2 %v2600_v11 }
 0x2df   : > { %928 = vmatpush.msra.mxu3 %v2658_v28 }
 0x2e0   : > { %889 = vmatpush.msra.mxu1 %v2611_v14  ;;  %909 = vmatpush.msra.mxu2 %v2614_v15 }
 0x2e1   : > { %929 = vmatpush.msra.mxu3 %v2670_v31 }
 0x2e2   : > { %890 = vmatpush.msra.mxu1 %v2623_v17  ;;  %910 = vmatpush.msra.mxu2 %v2626_v18 }
 0x2e3   : > { %930 = vmatpush.msra.mxu3 %v2682_v34 }
 0x2e4   : > { %891 = vmatpush.msra.mxu1 %v2637_v22  ;;  %911 = vmatpush.msra.mxu2 %v2640_v23 }
 0x2e5   : > { %931 = vmatpush.msra.mxu3 %v2694_v37 }
 0x2e6   : > { %892 = vmatpush.msra.mxu1 %v2646_v24  ;;  %912 = vmatpush.msra.mxu2 %v2652_v26 }
 0x2e7   : > { %932 = vmatpush.msra.mxu3 %v2706_v40 }
 0x2e8   : > { %893 = vmatpush.msra.mxu1 %v2661_v29  ;;  %913 = vmatpush.msra.mxu2 %v2664_v30 }
 0x2e9   : > { %933 = vmatpush.msra.mxu3 %v2718_v43 }
 0x2ea   : > { %894 = vmatpush.msra.mxu1 %v2673_v32  ;;  %914 = vmatpush.msra.mxu2 %v2676_v33 }
 0x2eb   : > { %934 = vmatpush.msra.mxu3 %v2731_v46 }
 0x2ec   : > { %895 = vmatpush.msra.mxu1 %v2685_v35  ;;  %915 = vmatpush.msra.mxu2 %v2688_v36 }
 0x2ed   : > { %935 = vmatpush.msra.mxu3 %v2738_v47 }
 0x2ee   : > { %896 = vmatpush.msra.mxu1 %v3408_v27  ;;  %916 = vmatpush.msra.mxu2 %v3409_v59 }
 0x2ef   : > { %936 = vmatpush.msra.mxu3 %v3410_v38 }
 0x2f0   : > { %897 = vmatpush.msra.mxu1 %v3411_v52  ;;  %917 = vmatpush.msra.mxu2 %v3412_v51 }
 0x2f1   : > { %937 = vmatpush.msra.mxu3 %v3413_v53 }
 0x2f2   : > { %898 = vmatpush.msra.mxu1 %v3414_v55  ;;  %918 = vmatpush.msra.mxu2 %v3415_v42 }
 0x2f3   : > { %899 = vmatmul.f32.vlgmr.msra.gmra.mxu1 %v2904_v61  ;;  %919 = vmatmul.f32.vlgmr.msra.gmra.mxu2 %v2904_v61 }
 0x2f4   : > { %938 = vmatpush.msra.mxu3 %v3416_v62 }
 0x2f5   : > { %939 = vmatmul.f32.vlgmr.msra.gmra.mxu3 %v2904_v61 }
 0x370   : > { %v900_v57 = vpop.f32.mrf.mxu1 }
 0x371   : > { %v947_v20 = vadd.f32 %v1759_v56, %v900_v57 }
 0x373   : > { %v1762_v58 = vmul.f32 -1.442695, %v947_v20 }
 0x375   : > { %1972 = vpow2.f32 %v1762_v58 }
 0x376   : > { %v920_v48 = vpop.f32.mrf.mxu2 }
 0x377   : > { %v967_v49 = vadd.f32 %v1760_v39, %v920_v48  ;;  %v1761_v39 = vld [vmem:[%s2533_s24 + $0x58] sm:$0xff] }
 0x378   : > { %v940_v38 = vpop.f32.mrf.mxu3 }
 0x379   : > { %v1763_v44 = vmul.f32 -1.442695, %v967_v49  ;;  %v987_v56 = vadd.f32 %v2759_v45, %v940_v38 }
 0x37b   : > { %v1973_v41 = vpop.eup %1972  ;;  %1974 = vpow2.f32 %v1763_v44 }
 0x37c   : > { %v951_v19 = vadd.f32 1.0, %v1973_v41 }
 0x37e   : > { %1976 = vrcp.f32 %v951_v19  ;;  %v963_v52 = vand.u32 2147483648, %v951_v19  ;;  %v961_v53 = vand.u32 2147483647, %v951_v19  ;;  %vm957_vm12 = vweird.f32 %v951_v19 }
 0x380   : > { %v964_v57 = vor.u32 1.1754944e-38, %v963_v52  ;;  %vm962_vm14 = vcmp.eq.f32.partialorder %v961_v53, 8.507059e+37 }
 0x381   : > { %v1975_v60 = vpop.eup %1974 }
 0x382   : > { %v971_v50 = vadd.f32 1.0, %v1975_v60 }
 0x384   : > { %v1977_v54 = vpop.eup %1976  ;;  %1978 = vrcp.f32 %v971_v50  ;;  %vm977_vm15 = vweird.f32 %v971_v50 }
 0x385   : > { %v953_v27 = vmul.f32 %v1977_v54, %v951_v19  ;;  %vm958_vm11 = vweird.f32 %v1977_v54 }
 0x386   : > { %vm959_vm13 = vmor %vm957_vm12, %vm958_vm11 }
 0x387   : > { %v954_v59 = vsub.f32 1.0, %v953_v27  ;;  %v983_v27 = vand.u32 2147483648, %v971_v50 }
 0x389   : > { %v955_v51 = vmul.f32 %v1977_v54, %v954_v59  ;;  %v981_v59 = vand.u32 2147483647, %v971_v50  ;;  %v984_v38 = vor.u32 1.1754944e-38, %v983_v27 }
 0x38a   : > { %v1979_v55 = vpop.eup %1978 }
 0x38b   : > { %v973_v42 = vmul.f32 %v1979_v55, %v971_v50  ;;  %v956_v62 = vadd.f32 %v1977_v54, %v955_v51  ;;  %vm978_vm0 = vweird.f32 %v1979_v55  ;;  %vm982_vm2 = vcmp.eq.f32.partialorder %v981_v59, 8.507059e+37 }
 0x38c   : > { %vm979_vm1 = vmor %vm977_vm15, %vm978_vm0 }
 0x38d   : > { %v974_v20 = vsub.f32 1.0, %v973_v42  ;;  %v960_v58 = vsel %vm959_vm13, %v1977_v54, %v956_v62 }
 0x38e   : > { %v965_v48 = vsel %vm962_vm14, %v964_v57, %v960_v58 }
 0x38f   : > { %v988_v49 = vmul.f32 %v987_v56, %v965_v48  ;;  %v975_v44 = vmul.f32 %v1979_v55, %v974_v20 }
 0x391   : > { %v989_v41 = vadd.f32 %v1761_v39, %v988_v49  ;;  %v976_v60 = vadd.f32 %v1979_v55, %v975_v44 }
 0x393   : > { %1980 = vtanh.f32 %v989_v41  ;;  %v980_v19 = vsel %vm979_vm1, %v1979_v55, %v976_v60 }
 0x394   : > { %v985_v54 = vsel %vm982_vm2, %v984_v38, %v980_v19 }
 0x399   : > { %v1981_v51 = vpop.eup %1980 }
 0x39a   : > { %v991_v52 = vsub.f32 %v2904_v61, %v1981_v51 }
 0x39c   : > { %v992_v53 = vmul.f32 %v991_v52, %v985_v54  ;;  %1000 = sbr.rel (%p1742_p3) target bundleno = 930 (0x3a2), region = 80 }
 0x39e   : > { %v993_v42 = vadd.f32 %v1981_v51, %v992_v53 }
 0x3a0   : > { %v2968_v62 = vsel %vm1764_vm3, %v993_v42, %v2904_v61 }
 0x3a1   : > { %1766 = vst [vmem:[%s2771_s5 + $0x18] sm:$0xff] %v2968_v62 }
 0x3a2 PF: > { %1005 = vmatpush.msrb.mxu0 %v2559_v0  ;;  %1025 = vmatpush.msrb.mxu1 %v2562_v1  ;;  %v3418_v61 = vld [vmem:[#allocation32_spill] sm:$0xff]  ;;  %v3419_v50 = vld [vmem:[#allocation33_spill] sm:$0xff]  ;;  %v3420_v55 = vld [vmem:[#allocation38_spill] sm:$0xff]  ;;  %vm1772_vm12 = vcmp.gt.s32.totalorder %v2763_v63, 4 }
 0x3a3   : > { %1045 = vmatpush.msrb.mxu2 %v2603_v12  ;;  %v3421_v56 = vld [vmem:[#allocation34_spill] sm:$0xff]  ;;  %v3422_v57 = vld [vmem:[#allocation35_spill] sm:$0xff]  ;;  %v3424_v58 = vld [vmem:[#allocation36_spill] sm:$0xff] }
 0x3a4   : > { %1006 = vmatpush.msrb.mxu0 %v2565_v2  ;;  %1026 = vmatpush.msrb.mxu1 %v2570_v3  ;;  %v3423_v20 = vld [vmem:[#allocation39_spill] sm:$0xff]  ;;  %v3425_v39 = vld [vmem:[#allocation37_spill] sm:$0xff]  ;;  %v3426_v48 = vld [vmem:[#allocation40_spill] sm:$0xff] }
 0x3a5   : > { %1046 = vmatpush.msrb.mxu2 %v2608_v13  ;;  %v1767_v49 = vld [vmem:[%s2533_s24 + $0x60] sm:$0xff]  ;;  %v1768_v44 = vld [vmem:[%s2533_s24 + $0x68] sm:$0xff] }
 0x3a6   : > { %1007 = vmatpush.msrb.mxu0 %v2573_v4  ;;  %1027 = vmatpush.msrb.mxu1 %v2576_v5 }
 0x3a7   : > { %1047 = vmatpush.msrb.mxu2 %v2620_v16 }
 0x3a8   : > { %1008 = vmatpush.msrb.mxu0 %v2581_v6  ;;  %1028 = vmatpush.msrb.mxu1 %v2584_v7 }
 0x3a9   : > { %1048 = vmatpush.msrb.mxu2 %v2634_v21 }
 0x3aa   : > { %1009 = vmatpush.msrb.mxu0 %v2589_v8  ;;  %1029 = vmatpush.msrb.mxu1 %v2592_v9 }
 0x3ab   : > { %1049 = vmatpush.msrb.mxu2 %v2649_v25 }
 0x3ac   : > { %1010 = vmatpush.msrb.mxu0 %v2597_v10  ;;  %1030 = vmatpush.msrb.mxu1 %v2600_v11 }
 0x3ad   : > { %1050 = vmatpush.msrb.mxu2 %v2658_v28 }
 0x3ae   : > { %1011 = vmatpush.msrb.mxu0 %v2611_v14  ;;  %1031 = vmatpush.msrb.mxu1 %v2614_v15 }
 0x3af   : > { %1051 = vmatpush.msrb.mxu2 %v2670_v31 }
 0x3b0   : > { %1012 = vmatpush.msrb.mxu0 %v2623_v17  ;;  %1032 = vmatpush.msrb.mxu1 %v2626_v18 }
 0x3b1   : > { %1052 = vmatpush.msrb.mxu2 %v2682_v34 }
 0x3b2   : > { %1013 = vmatpush.msrb.mxu0 %v2637_v22  ;;  %1033 = vmatpush.msrb.mxu1 %v2640_v23 }
 0x3b3   : > { %1053 = vmatpush.msrb.mxu2 %v2694_v37 }
 0x3b4   : > { %1014 = vmatpush.msrb.mxu0 %v2646_v24  ;;  %1034 = vmatpush.msrb.mxu1 %v2652_v26 }
 0x3b5   : > { %1054 = vmatpush.msrb.mxu2 %v2706_v40 }
 0x3b6   : > { %1015 = vmatpush.msrb.mxu0 %v2661_v29  ;;  %1035 = vmatpush.msrb.mxu1 %v2664_v30 }
 0x3b7   : > { %1055 = vmatpush.msrb.mxu2 %v2718_v43 }
 0x3b8   : > { %1016 = vmatpush.msrb.mxu0 %v2673_v32  ;;  %1036 = vmatpush.msrb.mxu1 %v2676_v33 }
 0x3b9   : > { %1056 = vmatpush.msrb.mxu2 %v2731_v46 }
 0x3ba   : > { %1017 = vmatpush.msrb.mxu0 %v2685_v35  ;;  %1037 = vmatpush.msrb.mxu1 %v2688_v36 }
 0x3bb   : > { %1057 = vmatpush.msrb.mxu2 %v2738_v47 }
 0x3bc   : > { %1018 = vmatpush.msrb.mxu0 %v3418_v61  ;;  %1038 = vmatpush.msrb.mxu1 %v3419_v50 }
 0x3bd   : > { %1058 = vmatpush.msrb.mxu2 %v3420_v55 }
 0x3be   : > { %1019 = vmatpush.msrb.mxu0 %v3421_v56  ;;  %1039 = vmatpush.msrb.mxu1 %v3422_v57 }
 0x3bf   : > { %1059 = vmatpush.msrb.mxu2 %v3423_v20 }
 0x3c0   : > { %1020 = vmatpush.msrb.mxu0 %v3424_v58  ;;  %1040 = vmatpush.msrb.mxu1 %v3425_v39 }
 0x3c1   : > { %1021 = vmatmul.f32.vlgmr.msrb.gmra.mxu0 %v2968_v62  ;;  %1041 = vmatmul.f32.vlgmr.msrb.gmra.mxu1 %v2968_v62 }
 0x3c2   : > { %1060 = vmatpush.msrb.mxu2 %v3426_v48 }
 0x3c3   : > { %1061 = vmatmul.f32.vlgmr.msrb.gmra.mxu2 %v2968_v62 }
 0x43e   : > { %v1022_v41 = vpop.f32.mrf.mxu0  ;;  %v1042_v60 = vpop.f32.mrf.mxu1 }
 0x43f   : > { %v1069_v27 = vadd.f32 %v1767_v49, %v1022_v41  ;;  %v1089_v59 = vadd.f32 %v1768_v44, %v1042_v60 }
 0x441   : > { %v1770_v19 = vmul.f32 -1.442695, %v1069_v27  ;;  %v1771_v51 = vmul.f32 -1.442695, %v1089_v59  ;;  %v1769_v27 = vld [vmem:[%s2533_s24 + $0x70] sm:$0xff] }
 0x443   : > { %1982 = vpow2.f32 %v1770_v19 }
 0x444   : > { %1984 = vpow2.f32 %v1771_v51 }
 0x446   : > { %v1062_v57 = vpop.f32.mrf.mxu2 }
 0x447   : > { %v1109_v49 = vadd.f32 %v2759_v45, %v1062_v57 }
 0x449   : > { %v1983_v38 = vpop.eup %1982 }
 0x44a   : > { %v1985_v52 = vpop.eup %1984  ;;  %v1073_v54 = vadd.f32 1.0, %v1983_v38 }
 0x44b   : > { %v1093_v53 = vadd.f32 1.0, %v1985_v52 }
 0x44c   : > { %1986 = vrcp.f32 %v1073_v54  ;;  %v1085_v20 = vand.u32 2147483648, %v1073_v54  ;;  %v1083_v39 = vand.u32 2147483647, %v1073_v54  ;;  %vm1079_vm5 = vweird.f32 %v1073_v54 }
 0x44d   : > { %1988 = vrcp.f32 %v1093_v53  ;;  %vm1099_vm8 = vweird.f32 %v1093_v53  ;;  %v1105_v52 = vand.u32 2147483648, %v1093_v53 }
 0x44e   : > { %v1086_v41 = vor.u32 1.1754944e-38, %v1085_v20  ;;  %vm1084_vm7 = vcmp.eq.f32.partialorder %v1083_v39, 8.507059e+37 }
 0x452   : > { %v1987_v42 = vpop.eup %1986 }
 0x453   : > { %v1989_v61 = vpop.eup %1988  ;;  %v1075_v50 = vmul.f32 %v1987_v42, %v1073_v54  ;;  %vm1080_vm4 = vweird.f32 %v1987_v42  ;;  %v1106_v54 = vor.u32 1.1754944e-38, %v1105_v52 }
 0x454   : > { %v1095_v56 = vmul.f32 %v1989_v61, %v1093_v53  ;;  %vm1081_vm6 = vmor %vm1079_vm5, %vm1080_vm4  ;;  %vm1100_vm9 = vweird.f32 %v1989_v61 }
 0x455   : > { %v1076_v55 = vsub.f32 1.0, %v1075_v50  ;;  %vm1101_vm10 = vmor %vm1099_vm8, %vm1100_vm9 }
 0x456   : > { %v1096_v44 = vsub.f32 1.0, %v1095_v56 }
 0x457   : > { %v1077_v58 = vmul.f32 %v1987_v42, %v1076_v55  ;;  %v1103_v55 = vand.u32 2147483647, %v1093_v53 }
 0x458   : > { %v1097_v51 = vmul.f32 %v1989_v61, %v1096_v44 }
 0x459   : > { %v1078_v48 = vadd.f32 %v1987_v42, %v1077_v58  ;;  %vm1104_vm11 = vcmp.eq.f32.partialorder %v1103_v55, 8.507059e+37 }
 0x45a   : > { %v1098_v50 = vadd.f32 %v1989_v61, %v1097_v51 }
 0x45b   : > { %v1082_v60 = vsel %vm1081_vm6, %v1987_v42, %v1078_v48 }
 0x45c   : > { %v1087_v59 = vsel %vm1084_vm7, %v1086_v41, %v1082_v60  ;;  %v1102_v57 = vsel %vm1101_vm10, %v1989_v61, %v1098_v50 }
 0x45d   : > { %v1110_v19 = vmul.f32 %v1109_v49, %v1087_v59  ;;  %v1107_v42 = vsel %vm1104_vm11, %v1106_v54, %v1102_v57 }
 0x45f   : > { %v1111_v38 = vadd.f32 %v1769_v27, %v1110_v19 }
 0x461   : > { %1990 = vtanh.f32 %v1111_v38 }
 0x467   : > { %v1991_v56 = vpop.eup %1990 }
 0x468   : > { %v1113_v20 = vsub.f32 %v2968_v62, %v1991_v56 }
 0x46a   : > { %v1114_v58 = vmul.f32 %v1113_v20, %v1107_v42  ;;  %1122 = sbr.rel (%p1742_p3) target bundleno = 1136 (0x470), region = 84 }
 0x46c   : > { %v1115_v39 = vadd.f32 %v1991_v56, %v1114_v58 }
 0x46e   : > { %v3032_v48 = vsel %vm1772_vm12, %v1115_v39, %v2968_v62 }
 0x46f   : > { %1774 = vst [vmem:[%s2771_s5 + $0x20] sm:$0xff] %v3032_v48 }
 0x470 PF: > { %1127 = vmatpush.msrb.mxu3 %v2559_v0  ;;  %1147 = vmatpush.msra.mxu0 %v2562_v1  ;;  %v3428_v62 = vld [vmem:[#allocation32_spill] sm:$0xff]  ;;  %v3429_v53 = vld [vmem:[#allocation33_spill] sm:$0xff]  ;;  %v3430_v61 = vld [vmem:[#allocation38_spill] sm:$0xff]  ;;  %vm1780_vm5 = vcmp.gt.s32.totalorder %v2763_v63, 5 }
 0x471   : > { %1167 = vmatpush.msra.mxu1 %v2603_v12  ;;  %v3431_v49 = vld [vmem:[#allocation34_spill] sm:$0xff]  ;;  %v3432_v44 = vld [vmem:[#allocation35_spill] sm:$0xff]  ;;  %v3434_v60 = vld [vmem:[#allocation36_spill] sm:$0xff] }
 0x472   : > { %1128 = vmatpush.msrb.mxu3 %v2565_v2  ;;  %1148 = vmatpush.msra.mxu0 %v2570_v3  ;;  %v3433_v41 = vld [vmem:[#allocation39_spill] sm:$0xff]  ;;  %v3435_v27 = vld [vmem:[#allocation37_spill] sm:$0xff]  ;;  %v3436_v59 = vld [vmem:[#allocation40_spill] sm:$0xff] }
 0x473   : > { %1168 = vmatpush.msra.mxu1 %v2608_v13  ;;  %v1776_v19 = vld [vmem:[%s2533_s24 + $0x80] sm:$0xff]  ;;  %v1775_v52 = vld [vmem:[%s2533_s24 + $0x78] sm:$0xff] }
 0x474   : > { %1129 = vmatpush.msrb.mxu3 %v2573_v4  ;;  %1149 = vmatpush.msra.mxu0 %v2576_v5 }
 0x475   : > { %1169 = vmatpush.msra.mxu1 %v2620_v16 }
 0x476   : > { %1130 = vmatpush.msrb.mxu3 %v2581_v6  ;;  %1150 = vmatpush.msra.mxu0 %v2584_v7 }
 0x477   : > { %1170 = vmatpush.msra.mxu1 %v2634_v21 }
 0x478   : > { %1131 = vmatpush.msrb.mxu3 %v2589_v8  ;;  %1151 = vmatpush.msra.mxu0 %v2592_v9 }
 0x479   : > { %1171 = vmatpush.msra.mxu1 %v2649_v25 }
 0x47a   : > { %1132 = vmatpush.msrb.mxu3 %v2597_v10  ;;  %1152 = vmatpush.msra.mxu0 %v2600_v11 }
 0x47b   : > { %1172 = vmatpush.msra.mxu1 %v2658_v28 }
 0x47c   : > { %1133 = vmatpush.msrb.mxu3 %v2611_v14  ;;  %1153 = vmatpush.msra.mxu0 %v2614_v15 }
 0x47d   : > { %1173 = vmatpush.msra.mxu1 %v2670_v31 }
 0x47e   : > { %1134 = vmatpush.msrb.mxu3 %v2623_v17  ;;  %1154 = vmatpush.msra.mxu0 %v2626_v18 }
 0x47f   : > { %1174 = vmatpush.msra.mxu1 %v2682_v34 }
 0x480   : > { %1135 = vmatpush.msrb.mxu3 %v2637_v22  ;;  %1155 = vmatpush.msra.mxu0 %v2640_v23 }
 0x481   : > { %1175 = vmatpush.msra.mxu1 %v2694_v37 }
 0x482   : > { %1136 = vmatpush.msrb.mxu3 %v2646_v24  ;;  %1156 = vmatpush.msra.mxu0 %v2652_v26 }
 0x483   : > { %1176 = vmatpush.msra.mxu1 %v2706_v40 }
 0x484   : > { %1137 = vmatpush.msrb.mxu3 %v2661_v29  ;;  %1157 = vmatpush.msra.mxu0 %v2664_v30 }
 0x485   : > { %1177 = vmatpush.msra.mxu1 %v2718_v43 }
 0x486   : > { %1138 = vmatpush.msrb.mxu3 %v2673_v32  ;;  %1158 = vmatpush.msra.mxu0 %v2676_v33 }
 0x487   : > { %1178 = vmatpush.msra.mxu1 %v2731_v46 }
 0x488   : > { %1139 = vmatpush.msrb.mxu3 %v2685_v35  ;;  %1159 = vmatpush.msra.mxu0 %v2688_v36 }
 0x489   : > { %1179 = vmatpush.msra.mxu1 %v2738_v47 }
 0x48a   : > { %1140 = vmatpush.msrb.mxu3 %v3428_v62  ;;  %1160 = vmatpush.msra.mxu0 %v3429_v53 }
 0x48b   : > { %1180 = vmatpush.msra.mxu1 %v3430_v61 }
 0x48c   : > { %1141 = vmatpush.msrb.mxu3 %v3431_v49  ;;  %1161 = vmatpush.msra.mxu0 %v3432_v44 }
 0x48d   : > { %1181 = vmatpush.msra.mxu1 %v3433_v41 }
 0x48e   : > { %1142 = vmatpush.msrb.mxu3 %v3434_v60  ;;  %1162 = vmatpush.msra.mxu0 %v3435_v27 }
 0x48f   : > { %1143 = vmatmul.f32.vlgmr.msrb.gmra.mxu3 %v3032_v48  ;;  %1163 = vmatmul.f32.vlgmr.msra.gmra.mxu0 %v3032_v48 }
 0x490   : > { %1182 = vmatpush.msra.mxu1 %v3436_v59 }
 0x491   : > { %1183 = vmatmul.f32.vlgmr.msra.gmra.mxu1 %v3032_v48 }
 0x50c   : > { %v1164_v51 = vpop.f32.mrf.mxu0 }
 0x50d   : > { %v1211_v38 = vadd.f32 %v1776_v19, %v1164_v51 }
 0x50e   : > { %v1184_v44 = vpop.f32.mrf.mxu1 }
 0x50f   : > { %v1779_v50 = vmul.f32 -1.442695, %v1211_v38  ;;  %v1231_v19 = vadd.f32 %v2759_v45, %v1184_v44 }
 0x511   : > { %1992 = vpow2.f32 %v1779_v50  ;;  %v1777_v50 = vld [vmem:[%s2533_s24 + $0x88] sm:$0xff] }
 0x512   : > { %v1144_v55 = vpop.f32.mrf.mxu3 }
 0x513   : > { %v1191_v54 = vadd.f32 %v1775_v52, %v1144_v55 }
 0x515   : > { %v1778_v57 = vmul.f32 -1.442695, %v1191_v54 }
 0x517   : > { %1994 = vpow2.f32 %v1778_v57  ;;  %v1993_v56 = vpop.eup %1992 }
 0x518   : > { %v1215_v42 = vadd.f32 1.0, %v1993_v56 }
 0x51a   : > { %vm1221_vm1 = vweird.f32 %v1215_v42 }
 0x51d   : > { %v1995_v20 = vpop.eup %1994 }
 0x51e   : > { %v1195_v58 = vadd.f32 1.0, %v1995_v20  ;;  %v1227_v20 = vand.u32 2147483648, %v1215_v42 }
 0x520   : > { %1996 = vrcp.f32 %v1195_v58  ;;  %v1207_v41 = vand.u32 2147483648, %v1195_v58  ;;  %v1205_v27 = vand.u32 2147483647, %v1195_v58  ;;  %vm1201_vm14 = vweird.f32 %v1195_v58 }
 0x521   : > { %1998 = vrcp.f32 %v1215_v42 }
 0x522   : > { %v1208_v38 = vor.u32 1.1754944e-38, %v1207_v41  ;;  %vm1206_vm0 = vcmp.eq.f32.partialorder %v1205_v27, 8.507059e+37 }
 0x526   : > { %v1997_v39 = vpop.eup %1996 }
 0x527   : > { %v1999_v62 = vpop.eup %1998  ;;  %v1197_v53 = vmul.f32 %v1997_v39, %v1195_v58  ;;  %vm1202_vm13 = vweird.f32 %v1997_v39  ;;  %v1228_v58 = vor.u32 1.1754944e-38, %v1227_v20 }
 0x528   : > { %v1217_v49 = vmul.f32 %v1999_v62, %v1215_v42  ;;  %vm1203_vm15 = vmor %vm1201_vm14, %vm1202_vm13  ;;  %vm1222_vm2 = vweird.f32 %v1999_v62 }
 0x529   : > { %v1198_v61 = vsub.f32 1.0, %v1197_v53  ;;  %vm1223_vm3 = vmor %vm1221_vm1, %vm1222_vm2 }
 0x52a   : > { %v1218_v51 = vsub.f32 1.0, %v1217_v49 }
 0x52b   : > { %v1199_v60 = vmul.f32 %v1997_v39, %v1198_v61  ;;  %v1225_v61 = vand.u32 2147483647, %v1215_v42 }
 0x52c   : > { %v1219_v57 = vmul.f32 %v1999_v62, %v1218_v51 }
 0x52d   : > { %v1200_v59 = vadd.f32 %v1997_v39, %v1199_v60  ;;  %vm1226_vm4 = vcmp.eq.f32.partialorder %v1225_v61, 8.507059e+37 }
 0x52e   : > { %v1220_v53 = vadd.f32 %v1999_v62, %v1219_v57 }
 0x52f   : > { %v1204_v52 = vsel %vm1203_vm15, %v1997_v39, %v1200_v59 }
 0x530   : > { %v1209_v55 = vsel %vm1206_vm0, %v1208_v38, %v1204_v52  ;;  %v1224_v44 = vsel %vm1223_vm3, %v1999_v62, %v1220_v53 }
 0x531   : > { %v1232_v54 = vmul.f32 %v1231_v19, %v1209_v55  ;;  %v1229_v39 = vsel %vm1226_vm4, %v1228_v58, %v1224_v44 }
 0x533   : > { %v1233_v56 = vadd.f32 %v1777_v50, %v1232_v54 }
 0x535   : > { %2000 = vtanh.f32 %v1233_v56 }
 0x53b   : > { %v2001_v49 = vpop.eup %2000 }
 0x53c   : > { %v1235_v41 = vsub.f32 %v3032_v48, %v2001_v49 }
 0x53e   : > { %v1236_v60 = vmul.f32 %v1235_v41, %v1229_v39  ;;  %1244 = sbr.rel (%p1742_p3) target bundleno = 1348 (0x544), region = 88 }
 0x540   : > { %v1237_v27 = vadd.f32 %v2001_v49, %v1236_v60 }
 0x542   : > { %v3096_v59 = vsel %vm1780_vm5, %v1237_v27, %v3032_v48 }
 0x543   : > { %1782 = vst [vmem:[%s2771_s5 + $0x28] sm:$0xff] %v3096_v59 }
 0x544 PF: > { %1249 = vmatpush.msra.mxu2 %v2559_v0  ;;  %1269 = vmatpush.msra.mxu3 %v2562_v1  ;;  %v3438_v48 = vld [vmem:[#allocation32_spill] sm:$0xff]  ;;  %v3439_v42 = vld [vmem:[#allocation33_spill] sm:$0xff]  ;;  %v3440_v62 = vld [vmem:[#allocation38_spill] sm:$0xff]  ;;  %vm1788_vm14 = vcmp.gt.s32.totalorder %v2763_v63, 6 }
 0x545   : > { %1289 = vmatpush.msrb.mxu0 %v2603_v12  ;;  %v3441_v19 = vld [vmem:[#allocation34_spill] sm:$0xff]  ;;  %v3442_v51 = vld [vmem:[#allocation35_spill] sm:$0xff]  ;;  %v3444_v52 = vld [vmem:[#allocation36_spill] sm:$0xff] }
 0x546   : > { %1250 = vmatpush.msra.mxu2 %v2565_v2  ;;  %1270 = vmatpush.msra.mxu3 %v2570_v3  ;;  %v3443_v38 = vld [vmem:[#allocation39_spill] sm:$0xff]  ;;  %v3445_v50 = vld [vmem:[#allocation37_spill] sm:$0xff]  ;;  %v3446_v55 = vld [vmem:[#allocation40_spill] sm:$0xff] }
 0x547   : > { %1290 = vmatpush.msrb.mxu0 %v2608_v13  ;;  %v1783_v54 = vld [vmem:[%s2533_s24 + $0x90] sm:$0xff]  ;;  %v1784_v57 = vld [vmem:[%s2533_s24 + $0x98] sm:$0xff] }
 0x548   : > { %1251 = vmatpush.msra.mxu2 %v2573_v4  ;;  %1271 = vmatpush.msra.mxu3 %v2576_v5 }
 0x549   : > { %1291 = vmatpush.msrb.mxu0 %v2620_v16 }
 0x54a   : > { %1252 = vmatpush.msra.mxu2 %v2581_v6  ;;  %1272 = vmatpush.msra.mxu3 %v2584_v7 }
 0x54b   : > { %1292 = vmatpush.msrb.mxu0 %v2634_v21 }
 0x54c   : > { %1253 = vmatpush.msra.mxu2 %v2589_v8  ;;  %1273 = vmatpush.msra.mxu3 %v2592_v9 }
 0x54d   : > { %1293 = vmatpush.msrb.mxu0 %v2649_v25 }
 0x54e   : > { %1254 = vmatpush.msra.mxu2 %v2597_v10  ;;  %1274 = vmatpush.msra.mxu3 %v2600_v11 }
 0x54f   : > { %1294 = vmatpush.msrb.mxu0 %v2658_v28 }
 0x550   : > { %1255 = vmatpush.msra.mxu2 %v2611_v14  ;;  %1275 = vmatpush.msra.mxu3 %v2614_v15 }
 0x551   : > { %1295 = vmatpush.msrb.mxu0 %v2670_v31 }
 0x552   : > { %1256 = vmatpush.msra.mxu2 %v2623_v17  ;;  %1276 = vmatpush.msra.mxu3 %v2626_v18 }
 0x553   : > { %1296 = vmatpush.msrb.mxu0 %v2682_v34 }
 0x554   : > { %1257 = vmatpush.msra.mxu2 %v2637_v22  ;;  %1277 = vmatpush.msra.mxu3 %v2640_v23 }
 0x555   : > { %1297 = vmatpush.msrb.mxu0 %v2694_v37 }
 0x556   : > { %1258 = vmatpush.msra.mxu2 %v2646_v24  ;;  %1278 = vmatpush.msra.mxu3 %v2652_v26 }
 0x557   : > { %1298 = vmatpush.msrb.mxu0 %v2706_v40 }
 0x558   : > { %1259 = vmatpush.msra.mxu2 %v2661_v29  ;;  %1279 = vmatpush.msra.mxu3 %v2664_v30 }
 0x559   : > { %1299 = vmatpush.msrb.mxu0 %v2718_v43 }
 0x55a   : > { %1260 = vmatpush.msra.mxu2 %v2673_v32  ;;  %1280 = vmatpush.msra.mxu3 %v2676_v33 }
 0x55b   : > { %1300 = vmatpush.msrb.mxu0 %v2731_v46 }
 0x55c   : > { %1261 = vmatpush.msra.mxu2 %v2685_v35  ;;  %1281 = vmatpush.msra.mxu3 %v2688_v36 }
 0x55d   : > { %1301 = vmatpush.msrb.mxu0 %v2738_v47 }
 0x55e   : > { %1262 = vmatpush.msra.mxu2 %v3438_v48  ;;  %1282 = vmatpush.msra.mxu3 %v3439_v42 }
 0x55f   : > { %1302 = vmatpush.msrb.mxu0 %v3440_v62 }
 0x560   : > { %1263 = vmatpush.msra.mxu2 %v3441_v19  ;;  %1283 = vmatpush.msra.mxu3 %v3442_v51 }
 0x561   : > { %1303 = vmatpush.msrb.mxu0 %v3443_v38 }
 0x562   : > { %1264 = vmatpush.msra.mxu2 %v3444_v52  ;;  %1284 = vmatpush.msra.mxu3 %v3445_v50 }
 0x563   : > { %1265 = vmatmul.f32.vlgmr.msra.gmra.mxu2 %v3096_v59  ;;  %1285 = vmatmul.f32.vlgmr.msra.gmra.mxu3 %v3096_v59 }
 0x564   : > { %1304 = vmatpush.msrb.mxu0 %v3446_v55 }
 0x565   : > { %1305 = vmatmul.f32.vlgmr.msrb.gmra.mxu0 %v3096_v59 }
 0x5e2   : > { %v1306_v51 = vpop.f32.mrf.mxu0 }
 0x5e6   : > { %v1266_v56 = vpop.f32.mrf.mxu2  ;;  %v1286_v20 = vpop.f32.mrf.mxu3 }
 0x5e7   : > { %v1313_v53 = vadd.f32 %v1783_v54, %v1266_v56  ;;  %v1333_v61 = vadd.f32 %v1784_v57, %v1286_v20  ;;  %v1353_v54 = vadd.f32 %v2759_v45, %v1306_v51 }
 0x5e9   : > { %v1786_v58 = vmul.f32 -1.442695, %v1313_v53  ;;  %v1787_v44 = vmul.f32 -1.442695, %v1333_v61  ;;  %v1785_v53 = vld [vmem:[%s2533_s24 + $0xa0] sm:$0xff] }
 0x5eb   : > { %2002 = vpow2.f32 %v1786_v58 }
 0x5ec   : > { %2004 = vpow2.f32 %v1787_v44 }
 0x5f1   : > { %v2003_v49 = vpop.eup %2002 }
 0x5f2   : > { %v2005_v41 = vpop.eup %2004  ;;  %v1317_v39 = vadd.f32 1.0, %v2003_v49 }
 0x5f3   : > { %v1337_v60 = vadd.f32 1.0, %v2005_v41 }
 0x5f4   : > { %2006 = vrcp.f32 %v1317_v39  ;;  %v1329_v38 = vand.u32 2147483648, %v1317_v39  ;;  %v1327_v50 = vand.u32 2147483647, %v1317_v39  ;;  %vm1323_vm7 = vweird.f32 %v1317_v39 }
 0x5f5   : > { %2008 = vrcp.f32 %v1337_v60  ;;  %vm1343_vm10 = vweird.f32 %v1337_v60  ;;  %v1349_v41 = vand.u32 2147483648, %v1337_v60 }
 0x5f6   : > { %v1330_v56 = vor.u32 1.1754944e-38, %v1329_v38  ;;  %vm1328_vm9 = vcmp.eq.f32.partialorder %v1327_v50, 8.507059e+37 }
 0x5fa   : > { %v2007_v27 = vpop.eup %2006 }
 0x5fb   : > { %v2009_v48 = vpop.eup %2008  ;;  %v1319_v42 = vmul.f32 %v2007_v27, %v1317_v39  ;;  %vm1324_vm6 = vweird.f32 %v2007_v27  ;;  %v1350_v39 = vor.u32 1.1754944e-38, %v1349_v41 }
 0x5fc   : > { %v1339_v19 = vmul.f32 %v2009_v48, %v1337_v60  ;;  %vm1325_vm8 = vmor %vm1323_vm7, %vm1324_vm6  ;;  %vm1344_vm11 = vweird.f32 %v2009_v48 }
 0x5fd   : > { %v1320_v62 = vsub.f32 1.0, %v1319_v42  ;;  %vm1345_vm12 = vmor %vm1343_vm10, %vm1344_vm11 }
 0x5fe   : > { %v1340_v57 = vsub.f32 1.0, %v1339_v19 }
 0x5ff   : > { %v1321_v52 = vmul.f32 %v2007_v27, %v1320_v62  ;;  %v1347_v62 = vand.u32 2147483647, %v1337_v60 }
 0x600   : > { %v1341_v44 = vmul.f32 %v2009_v48, %v1340_v57 }
 0x601   : > { %v1322_v55 = vadd.f32 %v2007_v27, %v1321_v52  ;;  %vm1348_vm13 = vcmp.eq.f32.partialorder %v1347_v62, 8.507059e+37 }
 0x602   : > { %v1342_v42 = vadd.f32 %v2009_v48, %v1341_v44 }
 0x603   : > { %v1326_v20 = vsel %vm1325_vm8, %v2007_v27, %v1322_v55 }
 0x604   : > { %v1331_v61 = vsel %vm1328_vm9, %v1330_v56, %v1326_v20  ;;  %v1346_v51 = vsel %vm1345_vm12, %v2009_v48, %v1342_v42 }
 0x605   : > { %v1354_v58 = vmul.f32 %v1353_v54, %v1331_v61  ;;  %v1351_v27 = vsel %vm1348_vm13, %v1350_v39, %v1346_v51 }
 0x607   : > { %v1355_v49 = vadd.f32 %v1785_v53, %v1354_v58 }
 0x609   : > { %2010 = vtanh.f32 %v1355_v49 }
 0x60f   : > { %v2011_v19 = vpop.eup %2010 }
 0x610   : > { %v1357_v38 = vsub.f32 %v3096_v59, %v2011_v19 }
 0x612   : > { %v1358_v52 = vmul.f32 %v1357_v38, %v1351_v27  ;;  %1366 = sbr.rel (%p1742_p3) target bundleno = 1560 (0x618), region = 92 }
 0x614   : > { %v1359_v50 = vadd.f32 %v2011_v19, %v1358_v52 }
 0x616   : > { %v3160_v55 = vsel %vm1788_vm14, %v1359_v50, %v3096_v59 }
 0x617   : > { %1790 = vst [vmem:[%s2771_s5 + $0x30] sm:$0xff] %v3160_v55 }
 0x618 PF: > { %1371 = vmatpush.msrb.mxu1 %v2559_v0  ;;  %1391 = vmatpush.msrb.mxu2 %v2562_v1  ;;  %v3448_v0 = vld [vmem:[#allocation32_spill] sm:$0xff]  ;;  %v3449_v1 = vld [vmem:[#allocation33_spill] sm:$0xff]  ;;  %vm1796_vm7 = vcmp.gt.s32.totalorder %v2763_v63, 7 }
 0x619   : > { %1411 = vmatpush.msrb.mxu3 %v2603_v12 }
 0x61a   : > { %1372 = vmatpush.msrb.mxu1 %v2565_v2  ;;  %1392 = vmatpush.msrb.mxu2 %v2570_v3  ;;  %v3450_v2 = vld [vmem:[#allocation38_spill] sm:$0xff] }
 0x61b   : > { %1412 = vmatpush.msrb.mxu3 %v2608_v13  ;;  %v3451_v3 = vld [vmem:[#allocation34_spill] sm:$0xff] }
 0x61c   : > { %1373 = vmatpush.msrb.mxu1 %v2573_v4  ;;  %1393 = vmatpush.msrb.mxu2 %v2576_v5  ;;  %v3452_v4 = vld [vmem:[#allocation35_spill] sm:$0xff]  ;;  %v1792_v13 = vld [vmem:[%s2533_s24 + $0xb0] sm:$0xff] }
 0x61d   : > { %1413 = vmatpush.msrb.mxu3 %v2620_v16  ;;  %v3453_v5 = vld [vmem:[#allocation39_spill] sm:$0xff] }
 0x61e   : > { %1374 = vmatpush.msrb.mxu1 %v2581_v6  ;;  %1394 = vmatpush.msrb.mxu2 %v2584_v7  ;;  %v3454_v6 = vld [vmem:[#allocation36_spill] sm:$0xff]  ;;  %v3455_v7 = vld [vmem:[#allocation37_spill] sm:$0xff] }
 0x61f   : > { %1414 = vmatpush.msrb.mxu3 %v2634_v21 }
 0x620   : > { %1375 = vmatpush.msrb.mxu1 %v2589_v8  ;;  %1395 = vmatpush.msrb.mxu2 %v2592_v9  ;;  %v3456_v8 = vld [vmem:[#allocation40_spill] sm:$0xff] }
 0x621   : > { %1415 = vmatpush.msrb.mxu3 %v2649_v25  ;;  %v1791_v9 = vld [vmem:[%s2533_s24 + $0xa8] sm:$0xff] }
 0x622   : > { %1376 = vmatpush.msrb.mxu1 %v2597_v10  ;;  %1396 = vmatpush.msrb.mxu2 %v2600_v11 }
 0x623   : > { %1416 = vmatpush.msrb.mxu3 %v2658_v28 }
 0x624   : > { %1377 = vmatpush.msrb.mxu1 %v2611_v14  ;;  %1397 = vmatpush.msrb.mxu2 %v2614_v15 }
 0x625   : > { %1417 = vmatpush.msrb.mxu3 %v2670_v31 }
 0x626   : > { %1378 = vmatpush.msrb.mxu1 %v2623_v17  ;;  %1398 = vmatpush.msrb.mxu2 %v2626_v18 }
 0x627   : > { %1418 = vmatpush.msrb.mxu3 %v2682_v34 }
 0x628   : > { %1379 = vmatpush.msrb.mxu1 %v2637_v22  ;;  %1399 = vmatpush.msrb.mxu2 %v2640_v23 }
 0x629   : > { %1419 = vmatpush.msrb.mxu3 %v2694_v37 }
 0x62a   : > { %1380 = vmatpush.msrb.mxu1 %v2646_v24  ;;  %1400 = vmatpush.msrb.mxu2 %v2652_v26 }
 0x62b   : > { %1420 = vmatpush.msrb.mxu3 %v2706_v40  ;;  %v1793_v40 = vld [vmem:[%s2533_s24 + $0xb8] sm:$0xff] }
 0x62c   : > { %1381 = vmatpush.msrb.mxu1 %v2661_v29  ;;  %1401 = vmatpush.msrb.mxu2 %v2664_v30 }
 0x62d   : > { %1421 = vmatpush.msrb.mxu3 %v2718_v43 }
 0x62e   : > { %1382 = vmatpush.msrb.mxu1 %v2673_v32  ;;  %1402 = vmatpush.msrb.mxu2 %v2676_v33 }
 0x62f   : > { %1422 = vmatpush.msrb.mxu3 %v2731_v46 }
 0x630   : > { %1383 = vmatpush.msrb.mxu1 %v2685_v35  ;;  %1403 = vmatpush.msrb.mxu2 %v2688_v36 }
 0x631   : > { %1423 = vmatpush.msrb.mxu3 %v2738_v47 }
 0x632   : > { %1384 = vmatpush.msrb.mxu1 %v3448_v0  ;;  %1404 = vmatpush.msrb.mxu2 %v3449_v1 }
 0x633   : > { %1424 = vmatpush.msrb.mxu3 %v3450_v2 }
 0x634   : > { %1385 = vmatpush.msrb.mxu1 %v3451_v3  ;;  %1405 = vmatpush.msrb.mxu2 %v3452_v4 }
 0x635   : > { %1425 = vmatpush.msrb.mxu3 %v3453_v5 }
 0x636   : > { %1386 = vmatpush.msrb.mxu1 %v3454_v6  ;;  %1406 = vmatpush.msrb.mxu2 %v3455_v7 }
 0x637   : > { %1387 = vmatmul.f32.vlgmr.msrb.gmra.mxu1 %v3160_v55  ;;  %1407 = vmatmul.f32.vlgmr.msrb.gmra.mxu2 %v3160_v55 }
 0x638   : > { %1426 = vmatpush.msrb.mxu3 %v3456_v8 }
 0x639   : > { %1427 = vmatmul.f32.vlgmr.msrb.gmra.mxu3 %v3160_v55 }
 0x6b4   : > { %v1388_v10 = vpop.f32.mrf.mxu1 }
 0x6b5   : > { %v1435_v11 = vadd.f32 %v1791_v9, %v1388_v10 }
 0x6b7   : > { %v1794_v12 = vmul.f32 -1.442695, %v1435_v11 }
 0x6b9   : > { %2012 = vpow2.f32 %v1794_v12 }
 0x6ba   : > { %v1408_v14 = vpop.f32.mrf.mxu2 }
 0x6bb   : > { %v1455_v15 = vadd.f32 %v1792_v13, %v1408_v14 }
 0x6bc   : > { %v1428_v26 = vpop.f32.mrf.mxu3 }
 0x6bd   : > { %v1795_v16 = vmul.f32 -1.442695, %v1455_v15  ;;  %v1475_v34 = vadd.f32 %v2759_v45, %v1428_v26 }
 0x6bf   : > { %v2013_v17 = vpop.eup %2012  ;;  %2014 = vpow2.f32 %v1795_v16 }
 0x6c0   : > { %v1439_v18 = vadd.f32 1.0, %v2013_v17 }
 0x6c2   : > { %2016 = vrcp.f32 %v1439_v18  ;;  %v1451_v28 = vand.u32 2147483648, %v1439_v18  ;;  %v1449_v30 = vand.u32 2147483647, %v1439_v18  ;;  %vm1445_vm0 = vweird.f32 %v1439_v18 }
 0x6c4   : > { %v1452_v35 = vor.u32 1.1754944e-38, %v1451_v28  ;;  %vm1450_vm2 = vcmp.eq.f32.partialorder %v1449_v30, 8.507059e+37 }
 0x6c5   : > { %v2015_v21 = vpop.eup %2014 }
 0x6c6   : > { %v1459_v22 = vadd.f32 1.0, %v2015_v21 }
 0x6c8   : > { %v2017_v23 = vpop.eup %2016  ;;  %2018 = vrcp.f32 %v1459_v22  ;;  %vm1465_vm3 = vweird.f32 %v1459_v22  ;;  %v1471_v48 = vand.u32 2147483648, %v1459_v22  ;;  %v1469_v54 = vand.u32 2147483647, %v1459_v22 }
 0x6c9   : > { %v1441_v24 = vmul.f32 %v2017_v23, %v1439_v18  ;;  %vm1446_vm15 = vweird.f32 %v2017_v23 }
 0x6ca   : > { %vm1447_vm1 = vmor %vm1445_vm0, %vm1446_vm15  ;;  %v1472_v45 = vor.u32 1.1754944e-38, %v1471_v48  ;;  %vm1470_vm6 = vcmp.eq.f32.partialorder %v1469_v54, 8.507059e+37 }
 0x6cb   : > { %v1442_v25 = vsub.f32 1.0, %v1441_v24 }
 0x6cd   : > { %v1443_v29 = vmul.f32 %v2017_v23, %v1442_v25 }
 0x6ce   : > { %v2019_v31 = vpop.eup %2018 }
 0x6cf   : > { %v1461_v32 = vmul.f32 %v2019_v31, %v1459_v22  ;;  %v1444_v33 = vadd.f32 %v2017_v23, %v1443_v29  ;;  %vm1466_vm4 = vweird.f32 %v2019_v31 }
 0x6d0   : > { %vm1467_vm5 = vmor %vm1465_vm3, %vm1466_vm4 }
 0x6d1   : > { %v1462_v36 = vsub.f32 1.0, %v1461_v32  ;;  %v1448_v37 = vsel %vm1447_vm1, %v2017_v23, %v1444_v33 }
 0x6d2   : > { %v1453_v43 = vsel %vm1450_vm2, %v1452_v35, %v1448_v37 }
 0x6d3   : > { %v1476_v46 = vmul.f32 %v1475_v34, %v1453_v43  ;;  %v1463_v47 = vmul.f32 %v2019_v31, %v1462_v36 }
 0x6d5   : > { %v1477_v59 = vadd.f32 %v1793_v40, %v1476_v46  ;;  %v1464_v60 = vadd.f32 %v2019_v31, %v1463_v47 }
 0x6d7   : > { %2020 = vtanh.f32 %v1477_v59  ;;  %v1468_v57 = vsel %vm1467_vm5, %v2019_v31, %v1464_v60 }
 0x6d8   : > { %v1473_v53 = vsel %vm1470_vm6, %v1472_v45, %v1468_v57 }
 0x6dd   : > { %v2021_v56 = vpop.eup %2020 }
 0x6de   : > { %v1479_v20 = vsub.f32 %v3160_v55, %v2021_v56 }
 0x6e0   : > { %v1480_v61 = vmul.f32 %v1479_v20, %v1473_v53  ;;  %1488 = sbr.rel (%p1742_p3) target bundleno = 1766 (0x6e6), region = 96 }
 0x6e2   : > { %v1481_v58 = vadd.f32 %v2021_v56, %v1480_v61 }
 0x6e4   : > { %v1485_v44 = vsel %vm1796_vm7, %v1481_v58, %v3160_v55 }
 0x6e5   : > { %1798 = vst [vmem:[%s2771_s5 + $0x38] sm:$0xff] %v1485_v44 }
 0x6e6 PF: > { %s3458_s6 = sld [smem:[#allocation23_spill]]  ;;  %1493 = vst [vmem:[%s2775_s9] sm:$0xff] %v1485_v44  ;;  %s1520_s4 = sshll.u32 %s2771_s5, 4  ;;  %s3231_s4 = int_to_ptr.vmem [resolvable:$true] %s1520_s4 }
 0x6e7   : > { %s3459_s17 = sld [smem:[#allocation21_spill]]  ;;  %s1538_s8 = sshll.u32 %s2775_s9, 4  ;;  %s3241_s8 = int_to_ptr.vmem [resolvable:$true] %s1538_s8 }
 0x6e8   : > { %s3461_s21 = sld [smem:[#allocation46_spill]] }
 0x6e9   : > { %s3463_s1 = sld [smem:[#allocation45_spill]] }
 0x6ec   : > { %p1507_p6 = scmp.ge.s32.totalorder %s3458_s6, 1  ;;  %s1511_s24 = sadd.s32 1, %s3458_s6 }
 0x6ed   : > { %s1803_s12 = sshll.u32 %s3458_s6, 3 }
 0x6ee   : > { %s1508_s14 = scalar_select %p1507_p6, 1, 0 }
 0x6ef   : > { %s3462_s18 = smov %s3461_s21  ;;  %s1536_s27 = scalar_lea.hbm %s3461_s21, %s1803_s12 }
 0x6f0   : > { %s1510_s19 = ssub.s32 1, %s1508_s14  ;;  %s1540_s0 = sshll.u32 %s1536_s27, 4  ;;  %s3243_s0 = int_to_ptr.hbm [resolvable:$true] %s1540_s0 }
 0x6f1   : > { %s1512_s20 = smul.u32 %s1511_s24, %s1510_s19  ;;  %s3464_s24 = sand.u32 1, %s3459_s17  }
 0x6f2   : > { %s1495_s14 = scalar_lea.sflag [#allocation5], %s3464_s24  ;;  %s2192_s12 = scalar_lea.hbm %s3463_s1, 128 }
 0x6f3   : > { %s1806_s10 = sshll.u32 %s1512_s20, 6 }
 0x6f4   : > { %s1519_s3 = scalar_lea.hbm %s3463_s1, %s1806_s10 }
 0x6f5   : > { %s1522_s5 = sshll.u32 %s1519_s3, 4  ;;  %s1523_s5 = int_to_ptr.hbm [resolvable:$true] %s1522_s5 }
 0x6f6   : > { %s2186_s6 = sshra.s32 %s1523_s5, 4  ;;  %s2187_s6 = int_to_ptr.hbm [resolvable:$true] %s2186_s6 }
 0x6f7   : > { %s2188_s9 = scalar_lea.hbm %s2187_s6, 64  ;;  %p2193_p1 = scmp.lt.s32.totalorder %s2187_s6, %s3463_s1 }
 0x6f8   : > { %p2189_p0 = scmp.ne.s32.totalorder %s2187_s6, %s2188_s9  ;;  %p2194_p5 = scmp.lt.s32.totalorder %s2192_s12, %s2188_s9 }
 0x6fa   : > { %p2190_p8 = pnand %p2189_p0, %p2434_p10  ;;  %p2195_p4 = por %p2194_p5, %p2193_p1 }
 0x6fc   : > { %p2191_p9 = pneg %p2190_p8 }
 0x6fe   : > { %p2196_p2 = pnand %p2195_p4, %p2191_p9 }
 0x700   : > { %2199 = shalt.err (!%p2196_p2)
}
 0x701   : > { %s2325_s3 = smov 128   ;;  %s2326_s7 = smov 8  }
 0x702   : > { %1827 = dma.vmem_to_hbm [thread:$0]  (%p2434_p10), %s3231_s4, 1024, %s1523_s5, %s1495_s14, %s2325_s3, %s2325_s3, %s2326_s7  }
 0x703   : > { %s1500_s21 = scalar_lea.sflag [#allocation14], %s2529_s11  ;;  %s2214_s27 = sshra.s32 %s3243_s0, 4  ;;  %s2215_s27 = int_to_ptr.hbm [resolvable:$true] %s2214_s27 }
 0x704   : > { %s2216_s16 = scalar_lea.hbm %s2215_s27, 8  ;;  %s2220_s6 = scalar_lea.hbm %s3462_s18, 16 }
 0x705   : > { %p2217_p7 = scmp.ne.s32.totalorder %s2215_s27, %s2216_s16  ;;  %p2221_p0 = scmp.lt.s32.totalorder %s2215_s27, %s3462_s18 }
 0x706   : > { %p2222_p8 = scmp.lt.s32.totalorder %s2220_s6, %s2216_s16 }
 0x707   : > { %p2218_p3 = pnand %p2217_p7, %p2438_p11 }
 0x708   : > { %p2223_p9 = por %p2222_p8, %p2221_p0 }
 0x709   : > { %p2219_p6 = pneg %p2218_p3 }
 0x70b   : > { %p2224_p1 = pnand %p2223_p9, %p2219_p6 }
 0x70d   : > { %2227 = shalt.err (!%p2224_p1)
}
 0x70e   : > { %1828 = dma.vmem_to_hbm [thread:$0]  (%p2438_p11), %s3241_s8, 128, %s3243_s0, %s1500_s21  }
 0x70f PF: > { %s3466_s11 = sld [smem:[#allocation20_spill]]  ;;  %p3468_p10 = scmp.ge.s32.totalorder %s2318_s29, 2 }
 0x711   : > { %p1849_p5 = pnand %p3468_p10, %p2442_p12 }
 0x713   : > { %p1850_p4 = pneg %p1849_p5 }
 0x715   : > { %s1552_s22 = sand.u32 1, %s3466_s11  }
 0x716   : > { %s1553_s5 = scalar_lea.sflag [#allocation5], %s1552_s22 }
 0x717   : > { %2277 = dma.done.wait (%p1850_p4), %s1553_s5, 1024  }
 0x718   : > { %2279 = vsyncadd (%p1850_p4), %s1553_s5, 4294966272  ;;  %s3469_s14 = sld [smem:[#allocation22_spill]]  ;;  %p3471_p2 = pmov %p3468_p10 }
 0x71a   : > { %p1852_p7 = pnand %p3471_p2, %p2446_p13 }
 0x71c   : > { %p1853_p11 = pneg %p1852_p7 }
 0x71e   : > { %s1562_s12 = sand.u32 1, %s3469_s14  }
 0x71f   : > { %s1563_s0 = scalar_lea.sflag [#allocation14], %s1562_s12 }
 0x720   : > { %2281 = dma.done.wait (%p1853_p11), %s1563_s0, 128  }
 0x721   : > { %2283 = vsyncadd (%p1853_p11), %s1563_s0, 4294967168  ;;  %s30_s29 = sadd.s32 1, %s2318_s29   ;;  %s3472_s21 = sld [smem:[#allocation21_spill]] }
 0x722   : > { %p27_p3 = scmp.ge.s32.totalorder %s30_s29, 4   ;;  %s3473_s8 = sld [smem:[#allocation31_spill]] }
 0x723   : > { %s3474_s10 = sld [smem:[#allocation30_spill]]  ;;  %s3475_s22 = smov %s2294_s23 }
 0x724   : > { %s3476_s23 = smov %s2505_s13  ;;  %s3477_s24 = smov %s2302_s25 }
 0x725   : > { %s3478_s25 = smov %s2306_s26  ;;  %s3480_s27 = smov %s2314_s28 }
 0x726   :  { %29 = sbr.rel (!%p27_p3) target bundleno = 20 (0x14), region = 186 }
 0x728   : > { %s3479_s26 = smov %s3473_s8 }
 0x729   : > { %s3481_s28 = smov %s3474_s10 }
 0x72b   :  { %1569 = vsyncpa [#allocation4], 1 }
 0x72c   :  { %1571 = vsyncpa [#allocation4 + $0x1], 1 }
 0x72d   :  { %1572 = vsyncpa [#allocation7], 1 }
 0x72e   :  { %1574 = vsyncpa [#allocation7 + $0x1], 1 }
 0x72f   :  { %1575 = vsyncpa [#allocation10], 1 }
 0x730   :  { %1576 = vsyncpa [#allocation5], 1 }
 0x731   :  { %1578 = vsyncpa [#allocation5 + $0x1], 1 }
 0x732   :  { %1579 = vsyncpa [#allocation14], 1 }
 0x733   :  { %1581 = vsyncpa [#allocation14 + $0x1], 1 }

</bundles_post_ra>
